<compile_context>
chip_gen: v7x
topology: tpu7x:2x2x1
jax: 0.10.0
libtpu: 0.0.40
codegen_flags: <defaults>
</compile_context>

<pallas_src>
import jax
import jax.numpy as jnp
from jax.experimental import pallas as pl
from jax.experimental.pallas import tpu as pltpu


# ----------------------------------------------------------------------------
# Small helpers
# ----------------------------------------------------------------------------
def _round_up(n, m):
    return ((n + m - 1) // m) * m


def _device_kind():
    try:
        return jax.devices()[0].device_kind.lower()
    except Exception:
        return ""


def _mxu_align():
    """256 on v6e/v7x (256x256 MXU), 128 on v5e and older."""
    k = _device_kind()
    if not k:
        return 128
    if any(t in k for t in ("v2", "v3", "v4", "v5")):
        return 128
    return 256


def _num_tensorcores():
    k = _device_kind()
    return 2 if ("v7" in k or "7x" in k) else 1


def _vmem_limit_bytes():
    """Generation-aware VMEM limit: ~0.75 * physical, capped at 100 MiB."""
    cap = None
    try:
        cap = getattr(pltpu.get_tpu_info(), "vmem_capacity_bytes", None)
    except Exception:
        cap = None
    if not cap:
        return 48 * 1024 * 1024          # safe everywhere (v7x physical = 64 MiB)
    return min(100 * 1024 * 1024, int(0.75 * cap))


def _pad_dim(d, align):
    # dims that fit a single 128-lane tile stay at 128; larger dims align to
    # the MXU width (256 on v6e/v7x, 128 on v5e).
    return 128 if d <= 128 else _round_up(d, align)


_N_CHUNK = 512   # lanes per accumulation chunk; bounds the f32 acc live range


# ----------------------------------------------------------------------------
# Fused kernel:
#   h0  = x_cont @ W1_cont + sum_c onehot(id_c) @ (E_c @ W1_cat_c) + b1
#   h   = relu(h0)                       (Dropout in eval mode = identity)
#   ... = relu(h @ Wi + bi) ...
#   out = h @ Wn + bn
# ----------------------------------------------------------------------------
def _make_mlp_kernel(num_layers, num_cats):
    def kernel(*refs):
        pos = 0
        x_ref = refs[pos]; pos += 1
        idx_ref = None
        if num_cats:
            idx_ref = refs[pos]; pos += 1                 # (bm, 128) int32
        m_refs = refs[pos:pos + num_cats]; pos += num_cats
        p_refs = refs[pos:pos + 2 * num_layers]
        out_ref = refs[-1]
        bm = x_ref.shape[0]

        # One-hot encodings of the categorical ids: the folded embedding
        # lookup becomes a (bm, vocab_pad) @ (vocab_pad, d1_pad) MXU matmul,
        # i.e. the gather is fully fused into the kernel.
        onehots = []
        for c in range(num_cats):
            v_pad = m_refs[c].shape[0]
            lane = jax.lax.broadcasted_iota(jnp.int32, (bm, v_pad), 1)
            oh = jnp.where(lane == idx_ref[:, c:c + 1], 1.0, 0.0)
            onehots.append(oh.astype(jnp.bfloat16))

        h = x_ref[...]                                    # bf16 (bm, d0_pad)
        for li in range(num_layers):
            w_ref = p_refs[2 * li]                        # bf16 (in_p, out_p)
            b_ref = p_refs[2 * li + 1]                    # f32  (1, out_p)
            out_p = w_ref.shape[1]
            is_last = li == num_layers - 1
            chunk = min(out_p, _N_CHUNK)
            parts = []
            for n0 in range(0, out_p, chunk):
                acc = jnp.dot(h, w_ref[:, n0:n0 + chunk],
                              preferred_element_type=jnp.float32)
                if li == 0:
                    for c in range(num_cats):
                        acc = acc + jnp.dot(onehots[c],
                                            m_refs[c][:, n0:n0 + chunk],
                                            preferred_element_type=jnp.float32)
                acc = acc + b_ref[:, n0:n0 + chunk]
                if is_last:
                    out_ref[:, n0:n0 + chunk] = acc.astype(out_ref.dtype)
                else:
                    # Dropout(eval)=identity; ReLU in f32 (v5e-safe VPU),
                    # cast to bf16 for the next MXU dot.
                    parts.append(jnp.maximum(acc, 0.0).astype(jnp.bfloat16))
            if not is_last:
                h = parts[0] if len(parts) == 1 else jnp.concatenate(parts, axis=-1)

    return kernel


# ----------------------------------------------------------------------------
# Parameter prep (done once): fold embeddings into layer 1, pad, cast to bf16.
# ----------------------------------------------------------------------------
def _fold_embeddings(params, cat_order, n_cont):
    weights = [jnp.asarray(w, jnp.float32) for w in params["weights"]]
    biases = [jnp.asarray(b, jnp.float32).reshape(1, -1) for b in params["biases"]]
    w1 = weights[0]
    tables, off = [], n_cont
    for c in cat_order:
        e = jnp.asarray(params["embeds"][c], jnp.float32)     # (vocab, cat_dims)
        cd = e.shape[1]
        tables.append(e @ w1[off:off + cd, :])                # (vocab, dims[1])
        off += cd
    assert off == w1.shape[0], "n_cont + sum(cat_dims) must equal dims[0]"
    weights = [w1[:n_cont, :]] + weights[1:]
    return weights, biases, tables


def prepare_pallas_params(params, cat_order, n_cont):
    align = _mxu_align()
    weights, biases, tables = _fold_embeddings(params, cat_order, n_cont)
    wp, bp = [], []
    for w, b in zip(weights, biases):
        fin, fout = w.shape
        fin_p, fout_p = _pad_dim(fin, align), _pad_dim(fout, align)
        wp.append(jnp.zeros((fin_p, fout_p), jnp.float32)
                  .at[:fin, :fout].set(w).astype(jnp.bfloat16))
        bp.append(jnp.zeros((1, fout_p), jnp.float32).at[:, :fout].set(b))
    d1_pad = wp[0].shape[1]
    tp = []
    for t in tables:
        v, d1 = t.shape
        v_pad = _pad_dim(v, align)
        tp.append(jnp.zeros((v_pad, d1_pad), jnp.float32)
                  .at[:v, :d1].set(t).astype(jnp.bfloat16))
    return {"wp": wp, "bp": bp, "tp": tp, "align": align,
            "n_cont": n_cont, "nclass": params["weights"][-1].shape[1]}


# ----------------------------------------------------------------------------
# VMEM budgeting (single-buffered resident params)
# ----------------------------------------------------------------------------
def _vmem_estimate(bm, wp, bp, tp, weight_buffers):
    d0 = wp[0].shape[0]
    dn = wp[-1].shape[1]
    dmax = max(w.shape[1] for w in wp)
    x_bytes = 2 * bm * d0 * 2                               # bf16 x block, 2 bufs
    idx_bytes = (2 * bm * 128 * 4) if tp else 0             # int32 ids, 2 bufs
    o_bytes = 2 * bm * dn * 2                               # bf16 out block, 2 bufs
    w_bytes = sum(weight_buffers * (w.size * 2 + b.size * 4)
                  for w, b in zip(wp, bp))
    t_bytes = sum(weight_buffers * t.size * 2 for t in tp)
    oh_bytes = sum(bm * t.shape[0] * 2 for t in tp)         # bf16 one-hots
    act_bytes = bm * dmax * 2 + 2 * bm * min(dmax, _N_CHUNK) * 4
    return (x_bytes + idx_bytes + o_bytes + w_bytes + t_bytes
            + oh_bytes + act_bytes)


def _const_spec(shape, single_buffer):
    # Constant index_map -> never re-DMA'd across the batch grid; request a
    # single VMEM buffer so the resident block isn't double-buffered.
    if single_buffer:
        try:
            return pl.BlockSpec(shape, lambda i: (0, 0),
                                pipeline_mode=pl.Buffered(1))
        except Exception:
            pass
    return pl.BlockSpec(shape, lambda i: (0, 0))


# ----------------------------------------------------------------------------
# Forward pass (fused embedding + MLP)
# ----------------------------------------------------------------------------
def extended_tab_model_forward(prep, x, cat, cat_order, *, bm=512):
    wp, bp, tp = prep["wp"], prep["bp"], prep["tp"]
    align = prep["align"]
    nclass = prep["nclass"]
    num_layers, num_cats = len(wp), len(tp)
    B, d_in = x.shape
    assert d_in == prep["n_cont"], (d_in, prep["n_cont"])

    d0_pad = wp[0].shape[0]
    ncls_pad = wp[-1].shape[1]
    vmem_limit = _vmem_limit_bytes()
    budget = int(0.8 * vmem_limit)

    # TODO(synk): if resident weights+tables alone exceed ~60% of vmem_limit
    # (possible on v7x's 64 MiB for very wide models), stream weight column
    # chunks with pltpu.emit_pipeline instead of keeping every layer resident.

    # ---- batch-tile selection ------------------------------------------------
    if B < 128:
        # Serving path: one grid step, minimal padding (16 rows satisfies both
        # f32 (8,128) and bf16 (16,128) sublane tiling).
        bm_eff = _round_up(B, 16)
    else:
        bm_eff = max(128, min(_round_up(bm, align), _round_up(B, align)))
        # Keep >=2 grid steps on 2-TC chips (v7x) so ("parallel",) shards.
        min_steps = _num_tensorcores()
        while bm_eff > 128 and (B + bm_eff - 1) // bm_eff < min_steps:
            bm_eff //= 2
        while bm_eff > 128 and _vmem_estimate(bm_eff, wp, bp, tp, 1) > budget:
            bm_eff //= 2
    Bp = _round_up(B, bm_eff)

    # ---- wrapper-side packing (bf16 before padding; no f32 intermediate) -----
    x_pad = jnp.zeros((Bp, d0_pad), jnp.bfloat16).at[:B, :d_in].set(
        x.astype(jnp.bfloat16))
    if num_cats:
        idx = jnp.stack([jnp.asarray(cat[c], jnp.int32) for c in cat_order],
                        axis=-1)                                   # (B, ncat)
        idx_pad = jnp.zeros((Bp, 128), jnp.int32).at[:B, :num_cats].set(idx)

    def build(single_buffer):
        in_specs = [pl.BlockSpec((bm_eff, d0_pad), lambda i: (i, 0))]
        operands = [x_pad]
        if num_cats:
            in_specs.append(pl.BlockSpec((bm_eff, 128), lambda i: (i, 0)))
            operands.append(idx_pad)
        for t in tp:
            in_specs.append(_const_spec(t.shape, single_buffer))
            operands.append(t)
        for w, b in zip(wp, bp):
            in_specs.append(_const_spec(w.shape, single_buffer))
            in_specs.append(_const_spec(b.shape, single_buffer))
            operands += [w, b]
        out_spec = pl.BlockSpec((bm_eff, ncls_pad), lambda i: (i, 0))
        return pl.pallas_call(
            _make_mlp_kernel(num_layers, num_cats),
            out_shape=jax.ShapeDtypeStruct((Bp, ncls_pad), jnp.bfloat16),
            grid_spec=pltpu.PrefetchScalarGridSpec(
                num_scalar_prefetch=0,
                grid=(Bp // bm_eff,),
                in_specs=in_specs,
                out_specs=out_spec,
            ),
            compiler_params=pltpu.CompilerParams(
                dimension_semantics=("parallel",),
                vmem_limit_bytes=vmem_limit,
            ),
        )(*operands)

    try:
        out = build(single_buffer=True)
    except Exception:
        # Fallback for jax versions where pl.Buffered(1) on resident blocks
        # is not accepted by the Mosaic pipeliner.
        out = build(single_buffer=False)

    return out[:B, :nclass].astype(jnp.float32)


# ----------------------------------------------------------------------------
# Parameter init + pure-JAX reference (matches the nn.Module semantics)
# ----------------------------------------------------------------------------
def init_params(key, dims, cat_dims, cats, nclass):
    params = {"embeds": {}, "weights": [], "biases": []}
    for c in sorted(cats):
        key, sub = jax.random.split(key)
        params["embeds"][c] = 0.1 * jax.random.normal(
            sub, (cats[c], cat_dims), jnp.float32)
    layer_sizes = list(zip(dims[:-1], dims[1:])) + [(dims[-1], nclass)]
    for (fin, fout) in layer_sizes:
        key, kw, kb = jax.random.split(key, 3)
        bound = 1.0 / jnp.sqrt(jnp.float32(fin))
        params["weights"].append(
            jax.random.uniform(kw, (fin, fout), jnp.float32, -bound, bound))
        params["biases"].append(
            jax.random.uniform(kb, (1, fout), jnp.float32, -bound, bound))
    return params


def reference_forward(params, x, cat, cat_order):
    emb = [params["embeds"][c][cat[c]] for c in cat_order]
    if emb:
        x = jnp.concatenate([x] + emb, axis=-1)
    h = x
    n = len(params["weights"])
    for i, (w, b) in enumerate(zip(params["weights"], params["biases"])):
        h = h @ w + b
        if i < n - 1:
            h = jnp.maximum(h, 0.0)     # Dropout (eval) = identity, then ReLU
    return h


# ----------------------------------------------------------------------------
if __name__ == "__main__":
    # Config consistent with the module: 12 continuous features + two
    # categorical features embedded to dim 2  =>  dims[0] = 12 + 2*2 = 16.
    B = 8
    n_cont = 12
    cat_dims = 2
    cats = {"c1": 10, "c2": 7}
    cat_order = sorted(cats)
    dims = [16, 32, 32]
    nclass = 5

    key = jax.random.PRNGKey(0)
    key, kx, k1, k2 = jax.random.split(key, 4)
    x = jax.random.normal(kx, (B, n_cont), jnp.float32)
    cat = {
        "c1": jax.random.randint(k1, (B,), 0, cats["c1"], jnp.int32),
        "c2": jax.random.randint(k2, (B,), 0, cats["c2"], jnp.int32),
    }

    params = init_params(jax.random.PRNGKey(42), dims, cat_dims, cats, nclass)

    # One-time offline prep: fold embeddings into layer 1, pad, cast to bf16.
    prep = prepare_pallas_params(params, cat_order, n_cont)

    out = extended_tab_model_forward(prep, x, cat, cat_order)
    out = jax.block_until_ready(out)

    ref = reference_forward(params, x, cat, cat_order)
    assert out.shape == (B, nclass), out.shape
    # bf16 MXU inputs / bf16 output slab with f32 accumulation -> relaxed tol.
    err = float(jnp.max(jnp.abs(out - ref)))
    assert jnp.allclose(out, ref, atol=3e-2, rtol=3e-2), f"max abs err {err}"

    print("KERNEL_OK")
</pallas_src>

<mosaic_0001>
module attributes {stable_mosaic.version = 11 : i64} {
  func.func @kernel(%arg0: i32, %arg1: memref<16x128xbf16, #tpu.memory_space<vmem>>, %arg2: memref<16x128xi32, #tpu.memory_space<vmem>>, %arg3: memref<128x128xbf16, #tpu.memory_space<vmem>>, %arg4: memref<128x128xbf16, #tpu.memory_space<vmem>>, %arg5: memref<128x128xbf16, #tpu.memory_space<vmem>>, %arg6: memref<1x128xf32, #tpu.memory_space<vmem>>, %arg7: memref<128x128xbf16, #tpu.memory_space<vmem>>, %arg8: memref<1x128xf32, #tpu.memory_space<vmem>>, %arg9: memref<128x128xbf16, #tpu.memory_space<vmem>>, %arg10: memref<1x128xf32, #tpu.memory_space<vmem>>, %arg11: memref<16x128xbf16, #tpu.memory_space<vmem>>) attributes {dimension_semantics = [#tpu.dimension_semantics<parallel>], iteration_bounds = array<i64: 1>, scalar_prefetch = 0 : i64, scratch_operands = 0 : i64, tpu.core_type = #tpu.core_type<tc>, window_params = [{transform_indices = @transform_0, window_bounds = array<i64: 16, 128>}, {transform_indices = @transform_1, window_bounds = array<i64: 16, 128>}, {pipeline_mode = #tpu.pipeline_mode<synchronous>, transform_indices = @transform_2, window_bounds = array<i64: 128, 128>}, {pipeline_mode = #tpu.pipeline_mode<synchronous>, transform_indices = @transform_3, window_bounds = array<i64: 128, 128>}, {pipeline_mode = #tpu.pipeline_mode<synchronous>, transform_indices = @transform_4, window_bounds = array<i64: 128, 128>}, {pipeline_mode = #tpu.pipeline_mode<synchronous>, transform_indices = @transform_5, window_bounds = array<i64: 1, 128>}, {pipeline_mode = #tpu.pipeline_mode<synchronous>, transform_indices = @transform_6, window_bounds = array<i64: 128, 128>}, {pipeline_mode = #tpu.pipeline_mode<synchronous>, transform_indices = @transform_7, window_bounds = array<i64: 1, 128>}, {pipeline_mode = #tpu.pipeline_mode<synchronous>, transform_indices = @transform_8, window_bounds = array<i64: 128, 128>}, {pipeline_mode = #tpu.pipeline_mode<synchronous>, transform_indices = @transform_9, window_bounds = array<i64: 1, 128>}, {transform_indices = @transform_10, window_bounds = array<i64: 16, 128>}]} {
    %0 = tpu.iota {dimensions = array<i32: 1>} : vector<16x128xi32>
    %c0 = arith.constant 0 : index
    %c0_0 = arith.constant 0 : index
    %1 = vector.load %arg2[%c0, %c0_0] : memref<16x128xi32, #tpu.memory_space<vmem>>, vector<16x1xi32>
    %2 = vector.broadcast %1 : vector<16x1xi32> to vector<16x128xi32>
    %3 = arith.cmpi eq, %0, %2 : vector<16x128xi32>
    %cst = arith.constant 1.000000e+00 : f32
    %cst_1 = arith.constant 0.000000e+00 : f32
    %4 = vector.broadcast %cst : f32 to vector<16x128xf32>
    %5 = vector.broadcast %cst_1 : f32 to vector<16x128xf32>
    %6 = arith.select %3, %4, %5 : vector<16x128xi1>, vector<16x128xf32>
    %7 = arith.truncf %6 : vector<16x128xf32> to vector<16x128xbf16>
    %8 = tpu.iota {dimensions = array<i32: 1>} : vector<16x128xi32>
    %c0_2 = arith.constant 0 : index
    %c1 = arith.constant 1 : index
    %9 = vector.load %arg2[%c0_2, %c1] : memref<16x128xi32, #tpu.memory_space<vmem>>, vector<16x1xi32>
    %10 = vector.broadcast %9 : vector<16x1xi32> to vector<16x128xi32>
    %11 = arith.cmpi eq, %8, %10 : vector<16x128xi32>
    %cst_3 = arith.constant 1.000000e+00 : f32
    %cst_4 = arith.constant 0.000000e+00 : f32
    %12 = vector.broadcast %cst_3 : f32 to vector<16x128xf32>
    %13 = vector.broadcast %cst_4 : f32 to vector<16x128xf32>
    %14 = arith.select %11, %12, %13 : vector<16x128xi1>, vector<16x128xf32>
    %15 = arith.truncf %14 : vector<16x128xf32> to vector<16x128xbf16>
    %c0_5 = arith.constant 0 : index
    %c0_6 = arith.constant 0 : index
    %16 = vector.load %arg1[%c0_5, %c0_6] : memref<16x128xbf16, #tpu.memory_space<vmem>>, vector<16x128xbf16>
    %c0_7 = arith.constant 0 : index
    %c0_8 = arith.constant 0 : index
    %17 = vector.load %arg5[%c0_7, %c0_8] : memref<128x128xbf16, #tpu.memory_space<vmem>>, vector<128x128xbf16>
    %cst_9 = arith.constant dense<0.000000e+00> : vector<16x128xf32>
    %18 = tpu.matmul %16, %17, %cst_9 {dimension_numbers = #tpu.dot_dimension_numbers<[1], [0], [0], [1], [0, 0, 1, 1], [], []>} : vector<16x128xbf16>, vector<128x128xbf16>, vector<16x128xf32> -> vector<16x128xf32>
    %c0_10 = arith.constant 0 : index
    %c0_11 = arith.constant 0 : index
    %19 = vector.load %arg3[%c0_10, %c0_11] : memref<128x128xbf16, #tpu.memory_space<vmem>>, vector<128x128xbf16>
    %cst_12 = arith.constant dense<0.000000e+00> : vector<16x128xf32>
    %20 = tpu.matmul %7, %19, %cst_12 {dimension_numbers = #tpu.dot_dimension_numbers<[1], [0], [0], [1], [0, 0, 1, 1], [], []>} : vector<16x128xbf16>, vector<128x128xbf16>, vector<16x128xf32> -> vector<16x128xf32>
    %21 = arith.addf %18, %20 : vector<16x128xf32>
    %c0_13 = arith.constant 0 : index
    %c0_14 = arith.constant 0 : index
    %22 = vector.load %arg4[%c0_13, %c0_14] : memref<128x128xbf16, #tpu.memory_space<vmem>>, vector<128x128xbf16>
    %cst_15 = arith.constant dense<0.000000e+00> : vector<16x128xf32>
    %23 = tpu.matmul %15, %22, %cst_15 {dimension_numbers = #tpu.dot_dimension_numbers<[1], [0], [0], [1], [0, 0, 1, 1], [], []>} : vector<16x128xbf16>, vector<128x128xbf16>, vector<16x128xf32> -> vector<16x128xf32>
    %24 = arith.addf %21, %23 : vector<16x128xf32>
    %c0_16 = arith.constant 0 : index
    %c0_17 = arith.constant 0 : index
    %25 = vector.load %arg6[%c0_16, %c0_17] : memref<1x128xf32, #tpu.memory_space<vmem>>, vector<1x128xf32>
    %26 = vector.broadcast %25 : vector<1x128xf32> to vector<16x128xf32>
    %27 = arith.addf %24, %26 : vector<16x128xf32>
    %cst_18 = arith.constant 0.000000e+00 : f32
    %28 = vector.broadcast %cst_18 : f32 to vector<16x128xf32>
    %29 = arith.maximumf %27, %28 : vector<16x128xf32>
    %30 = arith.truncf %29 : vector<16x128xf32> to vector<16x128xbf16>
    %c0_19 = arith.constant 0 : index
    %c0_20 = arith.constant 0 : index
    %31 = vector.load %arg7[%c0_19, %c0_20] : memref<128x128xbf16, #tpu.memory_space<vmem>>, vector<128x128xbf16>
    %cst_21 = arith.constant dense<0.000000e+00> : vector<16x128xf32>
    %32 = tpu.matmul %30, %31, %cst_21 {dimension_numbers = #tpu.dot_dimension_numbers<[1], [0], [0], [1], [0, 0, 1, 1], [], []>} : vector<16x128xbf16>, vector<128x128xbf16>, vector<16x128xf32> -> vector<16x128xf32>
    %c0_22 = arith.constant 0 : index
    %c0_23 = arith.constant 0 : index
    %33 = vector.load %arg8[%c0_22, %c0_23] : memref<1x128xf32, #tpu.memory_space<vmem>>, vector<1x128xf32>
    %34 = vector.broadcast %33 : vector<1x128xf32> to vector<16x128xf32>
    %35 = arith.addf %32, %34 : vector<16x128xf32>
    %cst_24 = arith.constant 0.000000e+00 : f32
    %36 = vector.broadcast %cst_24 : f32 to vector<16x128xf32>
    %37 = arith.maximumf %35, %36 : vector<16x128xf32>
    %38 = arith.truncf %37 : vector<16x128xf32> to vector<16x128xbf16>
    %c0_25 = arith.constant 0 : index
    %c0_26 = arith.constant 0 : index
    %39 = vector.load %arg9[%c0_25, %c0_26] : memref<128x128xbf16, #tpu.memory_space<vmem>>, vector<128x128xbf16>
    %cst_27 = arith.constant dense<0.000000e+00> : vector<16x128xf32>
    %40 = tpu.matmul %38, %39, %cst_27 {dimension_numbers = #tpu.dot_dimension_numbers<[1], [0], [0], [1], [0, 0, 1, 1], [], []>} : vector<16x128xbf16>, vector<128x128xbf16>, vector<16x128xf32> -> vector<16x128xf32>
    %c0_28 = arith.constant 0 : index
    %c0_29 = arith.constant 0 : index
    %41 = vector.load %arg10[%c0_28, %c0_29] : memref<1x128xf32, #tpu.memory_space<vmem>>, vector<1x128xf32>
    %42 = vector.broadcast %41 : vector<1x128xf32> to vector<16x128xf32>
    %43 = arith.addf %40, %42 : vector<16x128xf32>
    %44 = arith.truncf %43 : vector<16x128xf32> to vector<16x128xbf16>
    %c0_30 = arith.constant 0 : index
    %c0_31 = arith.constant 0 : index
    %45 = vector.load %arg11[%c0_30, %c0_31] : memref<16x128xbf16, #tpu.memory_space<vmem>>, vector<16x128xbf16>
    tpu.vector_store %arg11[%c0_30, %c0_31], %44 {strides = array<i32>} : memref<16x128xbf16, #tpu.memory_space<vmem>>, vector<16x128xbf16>,
    return
  }
  func.func @transform_0(%arg0: i32) -> (i32, i32) {
    %c0_i32 = arith.constant 0 : i32
    %c0_i32_0 = arith.constant 0 : i32
    return %arg0, %c0_i32 : i32, i32
  }
  func.func @transform_1(%arg0: i32) -> (i32, i32) {
    %c0_i32 = arith.constant 0 : i32
    %c0_i32_0 = arith.constant 0 : i32
    return %arg0, %c0_i32 : i32, i32
  }
  func.func @transform_2(%arg0: i32) -> (i32, i32) {
    %c0_i32 = arith.constant 0 : i32
    %c0_i32_0 = arith.constant 0 : i32
    %c0_i32_1 = arith.constant 0 : i32
    return %c0_i32, %c0_i32_0 : i32, i32
  }
  func.func @transform_3(%arg0: i32) -> (i32, i32) {
    %c0_i32 = arith.constant 0 : i32
    %c0_i32_0 = arith.constant 0 : i32
    %c0_i32_1 = arith.constant 0 : i32
    return %c0_i32, %c0_i32_0 : i32, i32
  }
  func.func @transform_4(%arg0: i32) -> (i32, i32) {
    %c0_i32 = arith.constant 0 : i32
    %c0_i32_0 = arith.constant 0 : i32
    %c0_i32_1 = arith.constant 0 : i32
    return %c0_i32, %c0_i32_0 : i32, i32
  }
  func.func @transform_5(%arg0: i32) -> (i32, i32) {
    %c0_i32 = arith.constant 0 : i32
    %c0_i32_0 = arith.constant 0 : i32
    %c0_i32_1 = arith.constant 0 : i32
    return %c0_i32, %c0_i32_0 : i32, i32
  }
  func.func @transform_6(%arg0: i32) -> (i32, i32) {
    %c0_i32 = arith.constant 0 : i32
    %c0_i32_0 = arith.constant 0 : i32
    %c0_i32_1 = arith.constant 0 : i32
    return %c0_i32, %c0_i32_0 : i32, i32
  }
  func.func @transform_7(%arg0: i32) -> (i32, i32) {
    %c0_i32 = arith.constant 0 : i32
    %c0_i32_0 = arith.constant 0 : i32
    %c0_i32_1 = arith.constant 0 : i32
    return %c0_i32, %c0_i32_0 : i32, i32
  }
  func.func @transform_8(%arg0: i32) -> (i32, i32) {
    %c0_i32 = arith.constant 0 : i32
    %c0_i32_0 = arith.constant 0 : i32
    %c0_i32_1 = arith.constant 0 : i32
    return %c0_i32, %c0_i32_0 : i32, i32
  }
  func.func @transform_9(%arg0: i32) -> (i32, i32) {
    %c0_i32 = arith.constant 0 : i32
    %c0_i32_0 = arith.constant 0 : i32
    %c0_i32_1 = arith.constant 0 : i32
    return %c0_i32, %c0_i32_0 : i32, i32
  }
  func.func @transform_10(%arg0: i32) -> (i32, i32) {
    %c0_i32 = arith.constant 0 : i32
    %c0_i32_0 = arith.constant 0 : i32
    return %arg0, %c0_i32 : i32, i32
  }
}

module attributes {stable_mosaic.version = 11 : i64} {
  func.func @kernel(%arg0: i32, %arg1: memref<16x128xbf16, #tpu.memory_space<vmem>>, %arg2: memref<16x128xi32, #tpu.memory_space<vmem>>, %arg3: memref<128x128xbf16, #tpu.memory_space<vmem>>, %arg4: memref<128x128xbf16, #tpu.memory_space<vmem>>, %arg5: memref<128x128xbf16, #tpu.memory_space<vmem>>, %arg6: memref<1x128xf32, #tpu.memory_space<vmem>>, %arg7: memref<128x128xbf16, #tpu.memory_space<vmem>>, %arg8: memref<1x128xf32, #tpu.memory_space<vmem>>, %arg9: memref<128x128xbf16, #tpu.memory_space<vmem>>, %arg10: memref<1x128xf32, #tpu.memory_space<vmem>>, %arg11: memref<16x128xbf16, #tpu.memory_space<vmem>>) attributes {dimension_semantics = [#tpu.dimension_semantics<parallel>], iteration_bounds = array<i64: 1>, scalar_prefetch = 0 : i64, scratch_operands = 0 : i64, tpu.core_type = #tpu.core_type<tc>, window_params = [{transform_indices = @transform_0, window_bounds = array<i64: 16, 128>}, {transform_indices = @transform_1, window_bounds = array<i64: 16, 128>}, {pipeline_mode = #tpu.pipeline_mode<synchronous>, transform_indices = @transform_2, window_bounds = array<i64: 128, 128>}, {pipeline_mode = #tpu.pipeline_mode<synchronous>, transform_indices = @transform_3, window_bounds = array<i64: 128, 128>}, {pipeline_mode = #tpu.pipeline_mode<synchronous>, transform_indices = @transform_4, window_bounds = array<i64: 128, 128>}, {pipeline_mode = #tpu.pipeline_mode<synchronous>, transform_indices = @transform_5, window_bounds = array<i64: 1, 128>}, {pipeline_mode = #tpu.pipeline_mode<synchronous>, transform_indices = @transform_6, window_bounds = array<i64: 128, 128>}, {pipeline_mode = #tpu.pipeline_mode<synchronous>, transform_indices = @transform_7, window_bounds = array<i64: 1, 128>}, {pipeline_mode = #tpu.pipeline_mode<synchronous>, transform_indices = @transform_8, window_bounds = array<i64: 128, 128>}, {pipeline_mode = #tpu.pipeline_mode<synchronous>, transform_indices = @transform_9, window_bounds = array<i64: 1, 128>}, {transform_indices = @transform_10, window_bounds = array<i64: 16, 128>}]} {
    %0 = tpu.iota {dimensions = array<i32: 1>} : vector<16x128xi32>
    %c0 = arith.constant 0 : index
    %c0_0 = arith.constant 0 : index
    %1 = vector.load %arg2[%c0, %c0_0] : memref<16x128xi32, #tpu.memory_space<vmem>>, vector<16x1xi32>
    %2 = vector.broadcast %1 : vector<16x1xi32> to vector<16x128xi32>
    %3 = arith.cmpi eq, %0, %2 : vector<16x128xi32>
    %cst = arith.constant 1.000000e+00 : f32
    %cst_1 = arith.constant 0.000000e+00 : f32
    %4 = vector.broadcast %cst : f32 to vector<16x128xf32>
    %5 = vector.broadcast %cst_1 : f32 to vector<16x128xf32>
    %6 = arith.select %3, %4, %5 : vector<16x128xi1>, vector<16x128xf32>
    %7 = arith.truncf %6 : vector<16x128xf32> to vector<16x128xbf16>
    %8 = tpu.iota {dimensions = array<i32: 1>} : vector<16x128xi32>
    %c0_2 = arith.constant 0 : index
    %c1 = arith.constant 1 : index
    %9 = vector.load %arg2[%c0_2, %c1] : memref<16x128xi32, #tpu.memory_space<vmem>>, vector<16x1xi32>
    %10 = vector.broadcast %9 : vector<16x1xi32> to vector<16x128xi32>
    %11 = arith.cmpi eq, %8, %10 : vector<16x128xi32>
    %cst_3 = arith.constant 1.000000e+00 : f32
    %cst_4 = arith.constant 0.000000e+00 : f32
    %12 = vector.broadcast %cst_3 : f32 to vector<16x128xf32>
    %13 = vector.broadcast %cst_4 : f32 to vector<16x128xf32>
    %14 = arith.select %11, %12, %13 : vector<16x128xi1>, vector<16x128xf32>
    %15 = arith.truncf %14 : vector<16x128xf32> to vector<16x128xbf16>
    %c0_5 = arith.constant 0 : index
    %c0_6 = arith.constant 0 : index
    %16 = vector.load %arg1[%c0_5, %c0_6] : memref<16x128xbf16, #tpu.memory_space<vmem>>, vector<16x128xbf16>
    %c0_7 = arith.constant 0 : index
    %c0_8 = arith.constant 0 : index
    %17 = vector.load %arg5[%c0_7, %c0_8] : memref<128x128xbf16, #tpu.memory_space<vmem>>, vector<128x128xbf16>
    %cst_9 = arith.constant dense<0.000000e+00> : vector<16x128xf32>
    %18 = tpu.matmul %16, %17, %cst_9 {dimension_numbers = #tpu.dot_dimension_numbers<[1], [0], [0], [1], [0, 0, 1, 1], [], []>} : vector<16x128xbf16>, vector<128x128xbf16>, vector<16x128xf32> -> vector<16x128xf32>
    %c0_10 = arith.constant 0 : index
    %c0_11 = arith.constant 0 : index
    %19 = vector.load %arg3[%c0_10, %c0_11] : memref<128x128xbf16, #tpu.memory_space<vmem>>, vector<128x128xbf16>
    %cst_12 = arith.constant dense<0.000000e+00> : vector<16x128xf32>
    %20 = tpu.matmul %7, %19, %cst_12 {dimension_numbers = #tpu.dot_dimension_numbers<[1], [0], [0], [1], [0, 0, 1, 1], [], []>} : vector<16x128xbf16>, vector<128x128xbf16>, vector<16x128xf32> -> vector<16x128xf32>
    %21 = arith.addf %18, %20 : vector<16x128xf32>
    %c0_13 = arith.constant 0 : index
    %c0_14 = arith.constant 0 : index
    %22 = vector.load %arg4[%c0_13, %c0_14] : memref<128x128xbf16, #tpu.memory_space<vmem>>, vector<128x128xbf16>
    %cst_15 = arith.constant dense<0.000000e+00> : vector<16x128xf32>
    %23 = tpu.matmul %15, %22, %cst_15 {dimension_numbers = #tpu.dot_dimension_numbers<[1], [0], [0], [1], [0, 0, 1, 1], [], []>} : vector<16x128xbf16>, vector<128x128xbf16>, vector<16x128xf32> -> vector<16x128xf32>
    %24 = arith.addf %21, %23 : vector<16x128xf32>
    %c0_16 = arith.constant 0 : index
    %c0_17 = arith.constant 0 : index
    %25 = vector.load %arg6[%c0_16, %c0_17] : memref<1x128xf32, #tpu.memory_space<vmem>>, vector<1x128xf32>
    %26 = vector.broadcast %25 : vector<1x128xf32> to vector<16x128xf32>
    %27 = arith.addf %24, %26 : vector<16x128xf32>
    %cst_18 = arith.constant 0.000000e+00 : f32
    %28 = vector.broadcast %cst_18 : f32 to vector<16x128xf32>
    %29 = arith.maximumf %27, %28 : vector<16x128xf32>
    %30 = arith.truncf %29 : vector<16x128xf32> to vector<16x128xbf16>
    %c0_19 = arith.constant 0 : index
    %c0_20 = arith.constant 0 : index
    %31 = vector.load %arg7[%c0_19, %c0_20] : memref<128x128xbf16, #tpu.memory_space<vmem>>, vector<128x128xbf16>
    %cst_21 = arith.constant dense<0.000000e+00> : vector<16x128xf32>
    %32 = tpu.matmul %30, %31, %cst_21 {dimension_numbers = #tpu.dot_dimension_numbers<[1], [0], [0], [1], [0, 0, 1, 1], [], []>} : vector<16x128xbf16>, vector<128x128xbf16>, vector<16x128xf32> -> vector<16x128xf32>
    %c0_22 = arith.constant 0 : index
    %c0_23 = arith.constant 0 : index
    %33 = vector.load %arg8[%c0_22, %c0_23] : memref<1x128xf32, #tpu.memory_space<vmem>>, vector<1x128xf32>
    %34 = vector.broadcast %33 : vector<1x128xf32> to vector<16x128xf32>
    %35 = arith.addf %32, %34 : vector<16x128xf32>
    %cst_24 = arith.constant 0.000000e+00 : f32
    %36 = vector.broadcast %cst_24 : f32 to vector<16x128xf32>
    %37 = arith.maximumf %35, %36 : vector<16x128xf32>
    %38 = arith.truncf %37 : vector<16x128xf32> to vector<16x128xbf16>
    %c0_25 = arith.constant 0 : index
    %c0_26 = arith.constant 0 : index
    %39 = vector.load %arg9[%c0_25, %c0_26] : memref<128x128xbf16, #tpu.memory_space<vmem>>, vector<128x128xbf16>
    %cst_27 = arith.constant dense<0.000000e+00> : vector<16x128xf32>
    %40 = tpu.matmul %38, %39, %cst_27 {dimension_numbers = #tpu.dot_dimension_numbers<[1], [0], [0], [1], [0, 0, 1, 1], [], []>} : vector<16x128xbf16>, vector<128x128xbf16>, vector<16x128xf32> -> vector<16x128xf32>
    %c0_28 = arith.constant 0 : index
    %c0_29 = arith.constant 0 : index
    %41 = vector.load %arg10[%c0_28, %c0_29] : memref<1x128xf32, #tpu.memory_space<vmem>>, vector<1x128xf32>
    %42 = vector.broadcast %41 : vector<1x128xf32> to vector<16x128xf32>
    %43 = arith.addf %40, %42 : vector<16x128xf32>
    %44 = arith.truncf %43 : vector<16x128xf32> to vector<16x128xbf16>
    %c0_30 = arith.constant 0 : index
    %c0_31 = arith.constant 0 : index
    %45 = vector.load %arg11[%c0_30, %c0_31] : memref<16x128xbf16, #tpu.memory_space<vmem>>, vector<16x128xbf16>
    tpu.vector_store %arg11[%c0_30, %c0_31], %44 {strides = array<i32>} : memref<16x128xbf16, #tpu.memory_space<vmem>>, vector<16x128xbf16>,
    return
  }
  func.func @transform_0(%arg0: i32) -> (i32, i32) {
    %c0_i32 = arith.constant 0 : i32
    %c0_i32_0 = arith.constant 0 : i32
    return %arg0, %c0_i32 : i32, i32
  }
  func.func @transform_1(%arg0: i32) -> (i32, i32) {
    %c0_i32 = arith.constant 0 : i32
    %c0_i32_0 = arith.constant 0 : i32
    return %arg0, %c0_i32 : i32, i32
  }
  func.func @transform_2(%arg0: i32) -> (i32, i32) {
    %c0_i32 = arith.constant 0 : i32
    %c0_i32_0 = arith.constant 0 : i32
    %c0_i32_1 = arith.constant 0 : i32
    return %c0_i32, %c0_i32_0 : i32, i32
  }
  func.func @transform_3(%arg0: i32) -> (i32, i32) {
    %c0_i32 = arith.constant 0 : i32
    %c0_i32_0 = arith.constant 0 : i32
    %c0_i32_1 = arith.constant 0 : i32
    return %c0_i32, %c0_i32_0 : i32, i32
  }
  func.func @transform_4(%arg0: i32) -> (i32, i32) {
    %c0_i32 = arith.constant 0 : i32
    %c0_i32_0 = arith.constant 0 : i32
    %c0_i32_1 = arith.constant 0 : i32
    return %c0_i32, %c0_i32_0 : i32, i32
  }
  func.func @transform_5(%arg0: i32) -> (i32, i32) {
    %c0_i32 = arith.constant 0 : i32
    %c0_i32_0 = arith.constant 0 : i32
    %c0_i32_1 = arith.constant 0 : i32
    return %c0_i32, %c0_i32_0 : i32, i32
  }
  func.func @transform_6(%arg0: i32) -> (i32, i32) {
    %c0_i32 = arith.constant 0 : i32
    %c0_i32_0 = arith.constant 0 : i32
    %c0_i32_1 = arith.constant 0 : i32
    return %c0_i32, %c0_i32_0 : i32, i32
  }
  func.func @transform_7(%arg0: i32) -> (i32, i32) {
    %c0_i32 = arith.constant 0 : i32
    %c0_i32_0 = arith.constant 0 : i32
    %c0_i32_1 = arith.constant 0 : i32
    return %c0_i32, %c0_i32_0 : i32, i32
  }
  func.func @transform_8(%arg0: i32) -> (i32, i32) {
    %c0_i32 = arith.constant 0 : i32
    %c0_i32_0 = arith.constant 0 : i32
    %c0_i32_1 = arith.constant 0 : i32
    return %c0_i32, %c0_i32_0 : i32, i32
  }
  func.func @transform_9(%arg0: i32) -> (i32, i32) {
    %c0_i32 = arith.constant 0 : i32
    %c0_i32_0 = arith.constant 0 : i32
    %c0_i32_1 = arith.constant 0 : i32
    return %c0_i32, %c0_i32_0 : i32, i32
  }
  func.func @transform_10(%arg0: i32) -> (i32, i32) {
    %c0_i32 = arith.constant 0 : i32
    %c0_i32_0 = arith.constant 0 : i32
    return %arg0, %c0_i32 : i32, i32
  }
}

</mosaic_0001>

<bundles_post_ra>
// kernel: tpu_custom_call.1
= control target key start
LH: loop header
LB: loop body
LE: loop exit
PB: predicated region body
PF: predicated region fallthrough
CT: control target
= control target key end

     0   :  { %15 = vsyncpa [#allocation3], 0  ;;  %s1449_s0 = inlined_call_operand.hbm [shape: bf16[16,128], index: 0, kind: input, shape index: {}]   ;;  %s1450_s1 = inlined_call_operand.hbm [shape: s32[16,128], index: 1, kind: input, shape index: {}]   ;;  %s1451_s2 = inlined_call_operand.hbm [shape: bf16[128,128], index: 2, kind: input, shape index: {}]   ;;  %s1452_s3 = inlined_call_operand.hbm [shape: bf16[128,128], index: 3, kind: input, shape index: {}]   ;;  %s1453_s4 = inlined_call_operand.hbm [shape: bf16[128,128], index: 4, kind: input, shape index: {}]   ;;  %s1454_s5 = inlined_call_operand.vmem [shape: f32[1,128], index: 5, kind: input, shape index: {}]   ;;  %s1455_s6 = inlined_call_operand.hbm [shape: bf16[128,128], index: 6, kind: input, shape index: {}]   ;;  %s1456_s7 = inlined_call_operand.vmem [shape: f32[1,128], index: 7, kind: input, shape index: {}]   ;;  %s1457_s8 = inlined_call_operand.hbm [shape: bf16[128,128], index: 8, kind: input, shape index: {}]   ;;  %s1458_s9 = inlined_call_operand.vmem [shape: f32[1,128], index: 9, kind: input, shape index: {}]   ;;  %s1459_s10 = inlined_call_operand.hbm [shape: bf16[16,128], index: 10, kind: output, shape index: {}]  }
   0x1   :  { %16 = vsyncpa [#allocation6], 0 }
   0x2   :  { %17 = vsyncpa [#allocation9], 0 }
   0x3   :  { %18 = vsyncpa [#allocation12], 0 }
   0x4   :  { %19 = vsyncpa [#allocation4], 0  ;;  %s1201_s13 = smov [#allocation5]   ;;  %s1015_s17 = scalar_lea.hbm %s1450_s1, 256 }
   0x5   :  { %s37_s14 = sshll.u32 %s1201_s13, 4  ;;  %p1016_p0 = scmp.ne.s32.totalorder %s1450_s1, %s1015_s17  ;;  %s38_s14 = int_to_ptr.vmem [resolvable:$true] %s37_s14 }
   0x6   :  { %p1019_p1 = scmp.lt.u32.totalorder %s1015_s17, %s1450_s1 }
   0x8   :  { %p1021_p2 = pnand %p1019_p1, %p1016_p0 }
   0xa   :  { %1024 = shalt.err (!%p1021_p2)
}
   0xb   :  { %s1025_s22 = scalar_lea.vmem %s38_s14, 256  ;;  %p1030_p4 = scmp.lt.s32.totalorder %s38_s14, %s38_s14 }
   0xc   :  { %p1026_p3 = scmp.ne.s32.totalorder %s38_s14, %s1025_s22  ;;  %p1031_p5 = scmp.lt.s32.totalorder %s1025_s22, %s1025_s22 }
   0xe   :  { %p1032_p6 = por %p1031_p5, %p1030_p4 }
  0x10   :  { %p1033_p7 = pnand %p1032_p6, %p1026_p3 }
  0x12   :  { %1036 = shalt.err (!%p1033_p7)
}
  0x13   :  { %s1202_s23 = smov 128   ;;  %s1203_s24 = smov 8  }
  0x14   :  { %43 = dma.hbm_to_vmem [thread:$0]  %s1450_s1, 256, %s38_s14, [#allocation6], %s1202_s23, %s1202_s23, %s1203_s24  }
  0x15   :  { %s1204_s27 = smov [#allocation8]   ;;  %s1205_s29 = smov [#allocation11]  }
  0x16   :  { %s61_s28 = sshll.u32 %s1204_s27, 4  ;;  %s87_s30 = sshll.u32 %s1205_s29, 4  ;;  %s62_s28 = int_to_ptr.vmem [resolvable:$true] %s61_s28  ;;  %s88_s30 = int_to_ptr.vmem [resolvable:$true] %s87_s30 }
  0x17   :  { %s1037_s13 = scalar_lea.hbm %s1452_s3, 1024 }
  0x18   :  { %p1038_p8 = scmp.ne.s32.totalorder %s1452_s3, %s1037_s13  ;;  %p1041_p9 = scmp.lt.u32.totalorder %s1037_s13, %s1452_s3 }
  0x1a   :  { %p1043_p10 = pnand %p1041_p9, %p1038_p8 }
  0x1c   :  { %1046 = shalt.err (!%p1043_p10)
}
  0x1d   :  { %s1047_s1 = scalar_lea.vmem %s62_s28, 1024  ;;  %p1052_p12 = scmp.lt.s32.totalorder %s62_s28, %s62_s28 }
  0x1e   :  { %p1048_p11 = scmp.ne.s32.totalorder %s62_s28, %s1047_s1  ;;  %p1053_p13 = scmp.lt.s32.totalorder %s1047_s1, %s1047_s1 }
  0x20   :  { %p1054_p0 = por %p1053_p13, %p1052_p12 }
  0x22   :  { %p1055_p1 = pnand %p1054_p0, %p1048_p11 }
  0x24   :  { %1058 = shalt.err (!%p1055_p1)
}
  0x25   :  { %s1206_s14 = smov 64   ;;  %s1207_s19 = smov 4  }
  0x26   :  { %67 = dma.hbm_to_vmem [thread:$0]  %s1452_s3, 1024, %s62_s28, [#allocation9], %s1206_s14, %s1206_s14, %s1207_s19  }
  0x27   :  { %s1059_s24 = scalar_lea.hbm %s1455_s6, 1024 }
  0x28   :  { %p1060_p2 = scmp.ne.s32.totalorder %s1455_s6, %s1059_s24  ;;  %p1063_p3 = scmp.lt.u32.totalorder %s1059_s24, %s1455_s6 }
  0x2a   :  { %p1065_p4 = pnand %p1063_p3, %p1060_p2 }
  0x2c   :  { %1068 = shalt.err (!%p1065_p4)
}
  0x2d   :  { %s1069_s11 = scalar_lea.vmem %s88_s30, 1024  ;;  %p1074_p6 = scmp.lt.s32.totalorder %s88_s30, %s88_s30 }
  0x2e   :  { %p1070_p5 = scmp.ne.s32.totalorder %s88_s30, %s1069_s11  ;;  %p1075_p7 = scmp.lt.s32.totalorder %s1069_s11, %s1069_s11 }
  0x30   :  { %p1076_p8 = por %p1075_p7, %p1074_p6 }
  0x32   :  { %p1077_p9 = pnand %p1076_p8, %p1070_p5 }
  0x34   :  { %1080 = shalt.err (!%p1077_p9)
}
  0x35   :  { %93 = dma.hbm_to_vmem [thread:$0]  %s1455_s6, 1024, %s88_s30, [#allocation12], %s1206_s14, %s1206_s14, %s1207_s19  }
  0x36   :  { %s1208_s12 = smov [#allocation2]   ;;  %s1209_s15 = smov [#allocation7]  }
  0x37   :  { %s25_s13 = sshll.u32 %s1208_s12, 4  ;;  %s49_s16 = sshll.u32 %s1209_s15, 4  ;;  %s26_s13 = int_to_ptr.vmem [resolvable:$true] %s25_s13  ;;  %s50_s16 = int_to_ptr.vmem [resolvable:$true] %s49_s16 }
  0x38   :  { %s1081_s1 = scalar_lea.hbm %s1449_s0, 128 }
  0x39   :  { %p1082_p10 = scmp.ne.s32.totalorder %s1449_s0, %s1081_s1  ;;  %p1085_p11 = scmp.lt.u32.totalorder %s1081_s1, %s1449_s0 }
  0x3b   :  { %p1087_p12 = pnand %p1085_p11, %p1082_p10 }
  0x3d   :  { %1090 = shalt.err (!%p1087_p12)
}
  0x3e   :  { %s1091_s6 = scalar_lea.vmem %s26_s13, 128  ;;  %p1096_p0 = scmp.lt.s32.totalorder %s26_s13, %s26_s13 }
  0x3f   :  { %p1092_p13 = scmp.ne.s32.totalorder %s26_s13, %s1091_s6  ;;  %p1097_p1 = scmp.lt.s32.totalorder %s1091_s6, %s1091_s6 }
  0x41   :  { %p1098_p2 = por %p1097_p1, %p1096_p0 }
  0x43   :  { %p1099_p3 = pnand %p1098_p2, %p1092_p13 }
  0x45   :  { %1102 = shalt.err (!%p1099_p3)
}
  0x46   :  { %31 = dma.hbm_to_vmem [thread:$0]  %s1449_s0, 128, %s26_s13, [#allocation3], %s1206_s14, %s1206_s14, %s1207_s19  }
  0x47   :  { %s1103_s27 = scalar_lea.hbm %s1451_s2, 1024 }
  0x48   :  { %p1104_p4 = scmp.ne.s32.totalorder %s1451_s2, %s1103_s27  ;;  %p1107_p5 = scmp.lt.u32.totalorder %s1103_s27, %s1451_s2 }
  0x4a   :  { %p1109_p6 = pnand %p1107_p5, %p1104_p4 }
  0x4c   :  { %1112 = shalt.err (!%p1109_p6)
}
  0x4d   :  { %s1113_s12 = scalar_lea.vmem %s50_s16, 1024  ;;  %p1118_p8 = scmp.lt.s32.totalorder %s50_s16, %s50_s16 }
  0x4e   :  { %p1114_p7 = scmp.ne.s32.totalorder %s50_s16, %s1113_s12  ;;  %p1119_p9 = scmp.lt.s32.totalorder %s1113_s12, %s1113_s12 }
  0x50   :  { %p1120_p10 = por %p1119_p9, %p1118_p8 }
  0x52   :  { %p1121_p11 = pnand %p1120_p10, %p1114_p7 }
  0x54   :  { %1124 = shalt.err (!%p1121_p11)
}
  0x55   :  { %55 = dma.hbm_to_vmem [thread:$0]  %s1451_s2, 1024, %s50_s16, [#allocation6], %s1206_s14, %s1206_s14, %s1207_s19  }
  0x56   :  { %s1210_s15 = smov [#allocation10]   ;;  %s1211_s18 = smov [#allocation13]  }
  0x57   :  { %s73_s17 = sshll.u32 %s1210_s15, 4  ;;  %s101_s1 = sshll.u32 %s1211_s18, 4  ;;  %s74_s17 = int_to_ptr.vmem [resolvable:$true] %s73_s17  ;;  %s102_s1 = int_to_ptr.vmem [resolvable:$true] %s101_s1 }
  0x58   :  { %s1125_s22 = scalar_lea.hbm %s1453_s4, 1024 }
  0x59   :  { %p1126_p12 = scmp.ne.s32.totalorder %s1453_s4, %s1125_s22  ;;  %p1129_p13 = scmp.lt.u32.totalorder %s1125_s22, %s1453_s4 }
  0x5b   :  { %p1131_p0 = pnand %p1129_p13, %p1126_p12 }
  0x5d   :  { %1134 = shalt.err (!%p1131_p0)
}
  0x5e   :  { %s1135_s2 = scalar_lea.vmem %s74_s17, 1024  ;;  %p1140_p2 = scmp.lt.s32.totalorder %s74_s17, %s74_s17 }
  0x5f   :  { %p1136_p1 = scmp.ne.s32.totalorder %s74_s17, %s1135_s2  ;;  %p1141_p3 = scmp.lt.s32.totalorder %s1135_s2, %s1135_s2 }
  0x61   :  { %p1142_p4 = por %p1141_p3, %p1140_p2 }
  0x63   :  { %p1143_p5 = pnand %p1142_p4, %p1136_p1 }
  0x65   :  { %1146 = shalt.err (!%p1143_p5)
}
  0x66   :  { %79 = dma.hbm_to_vmem [thread:$0]  %s1453_s4, 1024, %s74_s17, [#allocation9], %s1206_s14, %s1206_s14, %s1207_s19  }
  0x67   :  { %s1147_s29 = scalar_lea.hbm %s1457_s8, 1024 }
  0x68   :  { %p1148_p6 = scmp.ne.s32.totalorder %s1457_s8, %s1147_s29  ;;  %p1151_p7 = scmp.lt.u32.totalorder %s1147_s29, %s1457_s8 }
  0x6a   :  { %p1153_p8 = pnand %p1151_p7, %p1148_p6 }
  0x6c   :  { %1156 = shalt.err (!%p1153_p8)
}
  0x6d   :  { %s1157_s0 = scalar_lea.vmem %s102_s1, 1024  ;;  %p1162_p10 = scmp.lt.s32.totalorder %s102_s1, %s102_s1 }
  0x6e   :  { %p1158_p9 = scmp.ne.s32.totalorder %s102_s1, %s1157_s0  ;;  %p1163_p11 = scmp.lt.s32.totalorder %s1157_s0, %s1157_s0 }
  0x70   :  { %p1164_p12 = por %p1163_p11, %p1162_p10 }
  0x72   :  { %p1165_p13 = pnand %p1164_p12, %p1158_p9 }
  0x74   :  { %1168 = shalt.err (!%p1165_p13)
}
  0x75   :  { %107 = dma.hbm_to_vmem [thread:$0]  %s1457_s8, 1024, %s102_s1, [#allocation12], %s1206_s14, %s1206_s14, %s1207_s19  }
  0x76   :  { %1191 = dma.done.wait [#allocation3], 128  }
  0x77   :  { %1192 = vsyncadd [#allocation3], 4294967168 }
  0x78   :  { %1193 = dma.done.wait [#allocation6], 1280  }
  0x79   :  { %1194 = vsyncadd [#allocation6], 4294966016 }
  0x7a   :  { %1195 = dma.done.wait [#allocation9], 2048  }
  0x7b   :  { %1196 = vsyncadd [#allocation9], 4294965248 }
  0x7c   :  { %1197 = dma.done.wait [#allocation12], 2048  }
  0x7d   :  { %1198 = vsyncadd [#allocation12], 4294965248  ;;  %v1212_v0 = vmov 0   ;;  %v1213_v1 = vmov 1   ;;  %v1214_v2 = vmov 0.0   ;;  %v134_v3 = vld [vmem:[#allocation5] sm:$0xff]  ;;  %v132_v22 = vlaneseq }
  0x7e   :  { %971 = vset.pattern.permute.xlu0 %v1212_v0  ;;  %972 = vset.pattern.permute.xlu1 %v1213_v1  ;;  %v135_v4 = vld [vmem:[#allocation5 + $0x8] sm:$0xff]  ;;  %v974_v5 = vld [vmem:[#allocation7] sm:$0xff]   ;;  %v976_v7 = vld [vmem:[#allocation7 + $0x8] sm:$0xff]   ;;  %vm1215_vm0 = vmmov 0   ;;  %v1216_v27 = vmov 1.0|1.0  }
  0x7f   :  { %854 = vmatprep.subr.bf16.mxu0 %v1214_v2  ;;  %874 = vmatprep.subr.bf16.mxu1 %v1214_v2  ;;  %v975_v6 = vld [vmem:[#allocation10] sm:$0xff]   ;;  %v977_v8 = vld [vmem:[#allocation10 + $0x8] sm:$0xff]   ;;  %v978_v9 = vld [vmem:[#allocation7 + $0x10] sm:$0xff]   ;;  %v133_v24 = vand.u32 127, %v132_v22  ;;  %s1217_s20 = smov [#allocation14]  }
  0x80   :  { %137 = vperm.xlu0 %971, %v134_v3   ;;  %148 = vperm.xlu1 %972, %v134_v3   ;;  %v979_v10 = vld [vmem:[#allocation10 + $0x10] sm:$0xff]   ;;  %v980_v11 = vld [vmem:[#allocation7 + $0x18] sm:$0xff]   ;;  %v982_v13 = vld [vmem:[#allocation7 + $0x20] sm:$0xff]   ;;  %s737_s21 = sshll.u32 %s1217_s20, 4  ;;  %s738_s21 = int_to_ptr.vmem [resolvable:$true] %s737_s21 }
  0x81   :  { %855 = vmatpush3.bf16.msra.mxu0 %v974_v5  ;;  %875 = vmatpush3.bf16.msra.mxu1 %v975_v6  ;;  %v981_v12 = vld [vmem:[#allocation10 + $0x18] sm:$0xff]   ;;  %v983_v14 = vld [vmem:[#allocation10 + $0x20] sm:$0xff]   ;;  %v984_v15 = vld [vmem:[#allocation7 + $0x28] sm:$0xff]   ;;  %p1174_p1 = scmp.lt.s32.totalorder %s738_s21, %s738_s21 }
  0x82   :  { %856 = vmatprep.subr.bf16.mxu0 %v1214_v2  ;;  %876 = vmatprep.subr.bf16.mxu1 %v1214_v2  ;;  %v985_v16 = vld [vmem:[#allocation10 + $0x28] sm:$0xff]   ;;  %v986_v17 = vld [vmem:[#allocation7 + $0x30] sm:$0xff]   ;;  %v988_v19 = vld [vmem:[#allocation7 + $0x38] sm:$0xff]  }
  0x83   :  { %870 = vmatprep.mubr.msk.bf16.mxu0 %vm1215_vm0, %v1214_v2  ;;  %890 = vmatprep.mubr.msk.bf16.mxu1 %vm1215_vm0, %v1214_v2  ;;  %v987_v18 = vld [vmem:[#allocation10 + $0x30] sm:$0xff]   ;;  %v989_v20 = vld [vmem:[#allocation10 + $0x38] sm:$0xff]   ;;  %v990_v21 = vld [vmem:[#allocation2] sm:$0xff]  }
  0x84   :  { %140 = vperm.xlu0 %971, %v135_v4   ;;  %151 = vperm.xlu1 %972, %v135_v4   ;;  %v991_v26 = vld [vmem:[#allocation8] sm:$0xff]   ;;  %v992_v28 = vld [vmem:[#allocation8 + $0x8] sm:$0xff]   ;;  %v993_v29 = vld [vmem:[#allocation8 + $0x10] sm:$0xff]  }
  0x85   :  { %857 = vmatpush3.bf16.msra.mxu0 %v976_v7  ;;  %877 = vmatpush3.bf16.msra.mxu1 %v977_v8  ;;  %v994_v30 = vld [vmem:[#allocation8 + $0x18] sm:$0xff]   ;;  %v995_v31 = vld [vmem:[#allocation8 + $0x20] sm:$0xff]   ;;  %v996_v32 = vld [vmem:[#allocation8 + $0x28] sm:$0xff]  }
  0x86   :  { %858 = vmatprep.subr.bf16.mxu0 %v1214_v2  ;;  %878 = vmatprep.subr.bf16.mxu1 %v1214_v2  ;;  %v997_v34 = vld [vmem:[#allocation8 + $0x30] sm:$0xff]   ;;  %v998_v36 = vld [vmem:[#allocation8 + $0x38] sm:$0xff]   ;;  %v999_v37 = vld [vmem:[#allocation11] sm:$0xff]  }
  0x87   :  { %v1000_v38 = vld [vmem:[#allocation11 + $0x8] sm:$0xff]   ;;  %v1001_v39 = vld [vmem:[#allocation11 + $0x10] sm:$0xff]   ;;  %v1002_v40 = vld [vmem:[#allocation11 + $0x18] sm:$0xff]  }
  0x88   :  { %973 = vset.pattern.permute.xlu0 %v1213_v1  ;;  %v1003_v41 = vld [vmem:[#allocation11 + $0x20] sm:$0xff]   ;;  %v1004_v45 = vld [vmem:[#allocation11 + $0x28] sm:$0xff]   ;;  %v1005_v47 = vld [vmem:[#allocation11 + $0x30] sm:$0xff]  }
  0x89   :  { %859 = vmatpush3.bf16.msra.mxu0 %v978_v9  ;;  %879 = vmatpush3.bf16.msra.mxu1 %v979_v10  ;;  %v1006_v48 = vld [vmem:[#allocation11 + $0x38] sm:$0xff]   ;;  %v1007_v49 = vld [vmem:[#allocation13] sm:$0xff]   ;;  %v1008_v50 = vld [vmem:[#allocation13 + $0x8] sm:$0xff]  }
  0x8a   :  { %860 = vmatprep.subr.bf16.mxu0 %v1214_v2  ;;  %880 = vmatprep.subr.bf16.mxu1 %v1214_v2  ;;  %v1009_v51 = vld [vmem:[#allocation13 + $0x10] sm:$0xff]   ;;  %v1010_v52 = vld [vmem:[#allocation13 + $0x18] sm:$0xff]   ;;  %v1011_v53 = vld [vmem:[#allocation13 + $0x20] sm:$0xff]  }
  0x8b   :  { %v1012_v54 = vld [vmem:[#allocation13 + $0x28] sm:$0xff]   ;;  %v1013_v10 = vld [vmem:[#allocation13 + $0x30] sm:$0xff]  }
  0x8c   :  { %v781_v62 = vld [vmem:[%s1454_s5] ss:$0 sm:$0xff] }
  0x8d   :  { %861 = vmatpush3.bf16.msra.mxu0 %v980_v11  ;;  %881 = vmatpush3.bf16.msra.mxu1 %v981_v12  ;;  %v1014_v11 = vld [vmem:[#allocation13 + $0x38] sm:$0xff]   ;;  %v782_v12 = vld [vmem:[%s1456_s7] ss:$0 sm:$0xff]  ;;  %s1169_s7 = scalar_lea.vmem %s738_s21, 128 }
  0x8e   :  { %862 = vmatprep.subr.bf16.mxu0 %v1214_v2  ;;  %882 = vmatprep.subr.bf16.mxu1 %v1214_v2  ;;  %p1170_p0 = scmp.ne.s32.totalorder %s738_s21, %s1169_s7  ;;  %p1175_p2 = scmp.lt.s32.totalorder %s1169_s7, %s1169_s7 }
  0x90   :  { %p1176_p3 = por %p1175_p2, %p1174_p1 }
  0x91   :  { %863 = vmatpush3.bf16.msra.mxu0 %v982_v13  ;;  %883 = vmatpush3.bf16.msra.mxu1 %v983_v14 }
  0x92   :  { %864 = vmatprep.subr.bf16.mxu0 %v1214_v2  ;;  %884 = vmatprep.subr.bf16.mxu1 %v1214_v2  ;;  %p1177_p4 = pnand %p1176_p3, %p1170_p0 }
  0x95   :  { %865 = vmatpush3.bf16.msra.mxu0 %v984_v15  ;;  %885 = vmatpush3.bf16.msra.mxu1 %v985_v16 }
  0x96   :  { %866 = vmatprep.subr.bf16.mxu0 %v1214_v2  ;;  %886 = vmatprep.subr.bf16.mxu1 %v1214_v2 }
  0x99   :  { %867 = vmatpush3.bf16.msra.mxu0 %v986_v17  ;;  %887 = vmatpush3.bf16.msra.mxu1 %v987_v18 }
  0x9a   :  { %868 = vmatprep.subr.bf16.mxu0 %v1214_v2  ;;  %888 = vmatprep.subr.bf16.mxu1 %v1214_v2 }
  0x9d   :  { %869 = vmatpush3.bf16.msra.mxu0 %v988_v19  ;;  %889 = vmatpush3.bf16.msra.mxu1 %v989_v20 }
  0x9e   :  { %894 = vmatprep.subr.bf16.mxu0 %v1214_v2  ;;  %914 = vmatprep.subr.bf16.mxu1 %v1214_v2 }
  0xa0   :  { %891 = vmatmul.mubr.bf16.vlgmr.msra.gmra.mrb[0].mxu1 %v990_v21 }
  0xa1   :  { %930 = vmatprep.mubr.msk.bf16.mxu1 %vm1215_vm0, %v1214_v2  ;;  %915 = vmatpush3.bf16.msra.mxu1 %v999_v37 }
  0xa2   :  { %916 = vmatprep.subr.bf16.mxu1 %v1214_v2 }
  0xa5   :  { %917 = vmatpush3.bf16.msra.mxu1 %v1000_v38 }
  0xa6   :  { %918 = vmatprep.subr.bf16.mxu1 %v1214_v2 }
  0xa9   :  { %919 = vmatpush3.bf16.msra.mxu1 %v1001_v39 }
  0xaa   :  { %920 = vmatprep.subr.bf16.mxu1 %v1214_v2 }
  0xad   :  { %921 = vmatpush3.bf16.msra.mxu1 %v1002_v40 }
  0xae   :  { %922 = vmatprep.subr.bf16.mxu1 %v1214_v2 }
  0xb1   :  { %923 = vmatpush3.bf16.msra.mxu1 %v1003_v41 }
  0xb2   :  { %924 = vmatprep.subr.bf16.mxu1 %v1214_v2 }
  0xb5   :  { %925 = vmatpush3.bf16.msra.mxu1 %v1004_v45 }
  0xb6   :  { %926 = vmatprep.subr.bf16.mxu1 %v1214_v2 }
  0xb9   :  { %927 = vmatpush3.bf16.msra.mxu1 %v1005_v47 }
  0xba   :  { %928 = vmatprep.subr.bf16.mxu1 %v1214_v2 }
  0xbd   :  { %929 = vmatpush3.bf16.msra.mxu1 %v1006_v48 }
  0xff   :  { %v138_v23 = vpop.permute.xlu0 %137  ;;  %v149_v33 = vpop.permute.xlu1 %148 }
 0x100   :  { %vm142_vm1 = vcmp.eq.s32.totalorder %v133_v24, %v138_v23  ;;  %vm153_vm4 = vcmp.eq.s32.totalorder %v133_v24, %v149_v33 }
 0x103   :  { %v141_v25 = vpop.permute.xlu0 %140  ;;  %v152_v35 = vpop.permute.xlu1 %151 }
 0x104   :  { %vm143_vm2 = vcmp.eq.s32.totalorder %v133_v24, %v141_v25  ;;  %vm154_vm5 = vcmp.eq.s32.totalorder %v133_v24, %v152_v35 }
 0x105   :  { %vm760_vm3 = vmpackc.low %vm143_vm2, %vm142_vm1 }
 0x106   :  { %871 = vmatmul.mubr.msk.bf16.vlgmr.msra.gmra.mrb[0].mxu0 %vm760_vm3, %v1216_v27  ;;  %vm779_vm6 = vmpackc.low %vm154_vm5, %vm153_vm4 }
 0x107   :  { %895 = vmatpush3.bf16.msra.mxu0 %v991_v26  ;;  %910 = vmatprep.mubr.msk.bf16.mxu0 %vm1215_vm0, %v1214_v2 }
 0x108   :  { %896 = vmatprep.subr.bf16.mxu0 %v1214_v2 }
 0x10b   :  { %897 = vmatpush3.bf16.msra.mxu0 %v992_v28 }
 0x10c   :  { %898 = vmatprep.subr.bf16.mxu0 %v1214_v2 }
 0x10f   :  { %899 = vmatpush3.bf16.msra.mxu0 %v993_v29 }
 0x110   :  { %900 = vmatprep.subr.bf16.mxu0 %v1214_v2 }
 0x113   :  { %901 = vmatpush3.bf16.msra.mxu0 %v994_v30 }
 0x114   :  { %902 = vmatprep.subr.bf16.mxu0 %v1214_v2 }
 0x117   :  { %903 = vmatpush3.bf16.msra.mxu0 %v995_v31 }
 0x118   :  { %904 = vmatprep.subr.bf16.mxu0 %v1214_v2 }
 0x11b   :  { %905 = vmatpush3.bf16.msra.mxu0 %v996_v32 }
 0x11c   :  { %906 = vmatprep.subr.bf16.mxu0 %v1214_v2 }
 0x11f   :  { %907 = vmatpush3.bf16.msra.mxu0 %v997_v34 }
 0x120   :  { %908 = vmatprep.subr.bf16.mxu0 %v1214_v2 }
 0x123   :  { %909 = vmatpush3.bf16.msra.mxu0 %v998_v36 }
 0x124   :  { %934 = vmatprep.subr.bf16.mxu0 %v1214_v2 }
 0x126   :  { %911 = vmatmul.mubr.msk.bf16.vlgmr.msra.gmra.mrb[4].mxu0 %vm779_vm6, %v1216_v27 }
 0x127   :  { %950 = vmatprep.mubr.msk.bf16.mxu0 %vm1215_vm0, %v1214_v2  ;;  %935 = vmatpush3.bf16.msra.mxu0 %v1007_v49 }
 0x128   :  { %936 = vmatprep.subr.bf16.mxu0 %v1214_v2 }
 0x12b   :  { %937 = vmatpush3.bf16.msra.mxu0 %v1008_v50 }
 0x12c   :  { %938 = vmatprep.subr.bf16.mxu0 %v1214_v2 }
 0x12f   :  { %939 = vmatpush3.bf16.msra.mxu0 %v1009_v51 }
 0x130   :  { %940 = vmatprep.subr.bf16.mxu0 %v1214_v2 }
 0x133   :  { %941 = vmatpush3.bf16.msra.mxu0 %v1010_v52 }
 0x134   :  { %942 = vmatprep.subr.bf16.mxu0 %v1214_v2 }
 0x137   :  { %943 = vmatpush3.bf16.msra.mxu0 %v1011_v53 }
 0x138   :  { %944 = vmatprep.subr.bf16.mxu0 %v1214_v2 }
 0x13b   :  { %945 = vmatpush3.bf16.msra.mxu0 %v1012_v54 }
 0x13c   :  { %946 = vmatprep.subr.bf16.mxu0 %v1214_v2 }
 0x13f   :  { %947 = vmatpush3.bf16.msra.mxu0 %v1013_v10 }
 0x140   :  { %948 = vmatprep.subr.bf16.mxu0 %v1214_v2  ;;  %v791_v2 = vld [vmem:[%s1458_s9] ss:$0 sm:$0xff] }
 0x143   :  { %949 = vmatpush3.bf16.msra.mxu0 %v1014_v11 }
 0x173   :  { %v369_v42 = vpop.f32.mrb[0].mxu1 }
 0x174   :  { %v892_v43 = vpop.f32.mrb[1].mxu1 }
 0x175   :  { %v372_v44 = vpop.f32.mrb[2].mxu1 }
 0x176   :  { %v893_v46 = vpop.f32.mrb[3].mxu1 }
 0x1d9   :  { %v274_v55 = vpop.f32.mrb[0].mxu0 }
 0x1da   :  { %v370_v56 = vadd.f32 %v369_v42, %v274_v55  ;;  %v872_v57 = vpop.f32.mrb[1].mxu0 }
 0x1db   :  { %v277_v58 = vpop.f32.mrb[2].mxu0 }
 0x1dc   :  { %v373_v59 = vadd.f32 %v372_v44, %v277_v58  ;;  %v873_v60 = vpop.f32.mrb[3].mxu0 }
 0x1f9   :  { %v474_v61 = vpop.f32.mrb[4].mxu0 }
 0x1fa   :  { %v481_v63 = vadd.f32 %v474_v61, %v370_v56  ;;  %v912_v0 = vpop.f32.mrb[5].mxu0 }
 0x1fb   :  { %v477_v1 = vpop.f32.mrb[6].mxu0 }
 0x1fc   :  { %v490_v3 = vadd.f32 %v781_v62, %v481_v63  ;;  %v482_v4 = vadd.f32 %v477_v1, %v373_v59  ;;  %v913_v5 = vpop.f32.mrb[7].mxu0 }
 0x1fe   :  { %v491_v6 = vadd.f32 %v781_v62, %v482_v4  ;;  %v492_v7 = vmax.f32 %v490_v3, 0.0 }
 0x200   :  { %v493_v8 = vmax.f32 %v491_v6, 0.0 }
 0x202   :  { %v494_v9 = vpack.c.bf16 %v493_v8, %v492_v7 }
 0x204   :  { %931 = vmatmul.mubr.bf16.vlgmr.msra.gmra.mrb[4].mxu1 %v494_v9 }
 0x2d7   :  { %v600_v13 = vpop.f32.mrb[4].mxu1 }
 0x2d8   :  { %v601_v14 = vadd.f32 %v782_v12, %v600_v13  ;;  %v932_v15 = vpop.f32.mrb[5].mxu1 }
 0x2d9   :  { %v603_v16 = vpop.f32.mrb[6].mxu1 }
 0x2da   :  { %v604_v17 = vadd.f32 %v782_v12, %v603_v16  ;;  %v933_v18 = vpop.f32.mrb[7].mxu1  ;;  %v607_v19 = vmax.f32 %v601_v14, 0.0 }
 0x2dc   :  { %v608_v20 = vmax.f32 %v604_v17, 0.0 }
 0x2de   :  { %v609_v21 = vpack.c.bf16 %v608_v20, %v607_v19 }
 0x2e0   :  { %951 = vmatmul.mubr.bf16.vlgmr.msra.gmra.mrb[8].mxu0 %v609_v21 }
 0x3b3   :  { %v715_v22 = vpop.f32.mrb[8].mxu0 }
 0x3b4   :  { %v952_v23 = vpop.f32.mrb[9].mxu0  ;;  %v716_v25 = vadd.f32 %v791_v2, %v715_v22 }
 0x3b5   :  { %v718_v24 = vpop.f32.mrb[10].mxu0 }
 0x3b6   :  { %v719_v26 = vadd.f32 %v791_v2, %v718_v24  ;;  %v953_v27 = vpop.f32.mrb[11].mxu0 }
 0x3b8   :  { %v807_v28 = vpack.c.bf16 %v719_v26, %v716_v25 }
 0x3ba   :  { %808 = vst [vmem:[#allocation14] sm:$0xff] %v807_v28  }
 0x3bb   :  { %1180 = shalt.err (!%p1177_p4)
}
 0x3bc   :  { %s1181_s23 = scalar_lea.hbm %s1459_s10, 128 }
 0x3bd   :  { %p1182_p5 = scmp.ne.s32.totalorder %s1459_s10, %s1181_s23  ;;  %p1185_p6 = scmp.lt.u32.totalorder %s1181_s23, %s1459_s10 }
 0x3bf   :  { %p1187_p7 = pnand %p1185_p6, %p1182_p5 }
 0x3c1   :  { %1190 = shalt.err (!%p1187_p7)
}
 0x3c2   :  { %743 = dma.vmem_to_hbm [thread:$0]  %s738_s21, 128, %s1459_s10, [#allocation4], %s1206_s14, %s1206_s14, %s1207_s19  }
 0x3c3   :  { %1199 = dma.done.wait [#allocation4], 128  }
 0x3c4   :  { %1200 = vsyncadd [#allocation4], 4294967168 }
 0x3c5   :  { %747 = vsyncpa [#allocation3], 1 }
 0x3c6   :  { %748 = vsyncpa [#allocation6], 1 }
 0x3c7   :  { %749 = vsyncpa [#allocation9], 1 }
 0x3c8   :  { %750 = vsyncpa [#allocation12], 1 }
 0x3c9   :  { %751 = vsyncpa [#allocation4], 1 }

// kernel: tpu_custom_call.1
= control target key start
LH: loop header
LB: loop body
LE: loop exit
PB: predicated region body
PF: predicated region fallthrough
CT: control target
= control target key end

     0   :  { %15 = vsyncpa [#allocation3], 0  ;;  %s1449_s0 = inlined_call_operand.hbm [shape: bf16[16,128], index: 0, kind: input, shape index: {}]   ;;  %s1450_s1 = inlined_call_operand.hbm [shape: s32[16,128], index: 1, kind: input, shape index: {}]   ;;  %s1451_s2 = inlined_call_operand.hbm [shape: bf16[128,128], index: 2, kind: input, shape index: {}]   ;;  %s1452_s3 = inlined_call_operand.hbm [shape: bf16[128,128], index: 3, kind: input, shape index: {}]   ;;  %s1453_s4 = inlined_call_operand.hbm [shape: bf16[128,128], index: 4, kind: input, shape index: {}]   ;;  %s1454_s5 = inlined_call_operand.vmem [shape: f32[1,128], index: 5, kind: input, shape index: {}]   ;;  %s1455_s6 = inlined_call_operand.hbm [shape: bf16[128,128], index: 6, kind: input, shape index: {}]   ;;  %s1456_s7 = inlined_call_operand.vmem [shape: f32[1,128], index: 7, kind: input, shape index: {}]   ;;  %s1457_s8 = inlined_call_operand.hbm [shape: bf16[128,128], index: 8, kind: input, shape index: {}]   ;;  %s1458_s9 = inlined_call_operand.vmem [shape: f32[1,128], index: 9, kind: input, shape index: {}]   ;;  %s1459_s10 = inlined_call_operand.hbm [shape: bf16[16,128], index: 10, kind: output, shape index: {}]  }
   0x1   :  { %16 = vsyncpa [#allocation6], 0 }
   0x2   :  { %17 = vsyncpa [#allocation9], 0 }
   0x3   :  { %18 = vsyncpa [#allocation12], 0 }
   0x4   :  { %19 = vsyncpa [#allocation4], 0  ;;  %s1201_s13 = smov [#allocation5]   ;;  %s1015_s17 = scalar_lea.hbm %s1450_s1, 256 }
   0x5   :  { %s37_s14 = sshll.u32 %s1201_s13, 4  ;;  %p1016_p0 = scmp.ne.s32.totalorder %s1450_s1, %s1015_s17  ;;  %s38_s14 = int_to_ptr.vmem [resolvable:$true] %s37_s14 }
   0x6   :  { %p1019_p1 = scmp.lt.u32.totalorder %s1015_s17, %s1450_s1 }
   0x8   :  { %p1021_p2 = pnand %p1019_p1, %p1016_p0 }
   0xa   :  { %1024 = shalt.err (!%p1021_p2)
}
   0xb   :  { %s1025_s22 = scalar_lea.vmem %s38_s14, 256  ;;  %p1030_p4 = scmp.lt.s32.totalorder %s38_s14, %s38_s14 }
   0xc   :  { %p1026_p3 = scmp.ne.s32.totalorder %s38_s14, %s1025_s22  ;;  %p1031_p5 = scmp.lt.s32.totalorder %s1025_s22, %s1025_s22 }
   0xe   :  { %p1032_p6 = por %p1031_p5, %p1030_p4 }
  0x10   :  { %p1033_p7 = pnand %p1032_p6, %p1026_p3 }
  0x12   :  { %1036 = shalt.err (!%p1033_p7)
}
  0x13   :  { %s1202_s23 = smov 128   ;;  %s1203_s24 = smov 8  }
  0x14   :  { %43 = dma.hbm_to_vmem [thread:$0]  %s1450_s1, 256, %s38_s14, [#allocation6], %s1202_s23, %s1202_s23, %s1203_s24  }
  0x15   :  { %s1204_s27 = smov [#allocation8]   ;;  %s1205_s29 = smov [#allocation11]  }
  0x16   :  { %s61_s28 = sshll.u32 %s1204_s27, 4  ;;  %s87_s30 = sshll.u32 %s1205_s29, 4  ;;  %s62_s28 = int_to_ptr.vmem [resolvable:$true] %s61_s28  ;;  %s88_s30 = int_to_ptr.vmem [resolvable:$true] %s87_s30 }
  0x17   :  { %s1037_s13 = scalar_lea.hbm %s1452_s3, 1024 }
  0x18   :  { %p1038_p8 = scmp.ne.s32.totalorder %s1452_s3, %s1037_s13  ;;  %p1041_p9 = scmp.lt.u32.totalorder %s1037_s13, %s1452_s3 }
  0x1a   :  { %p1043_p10 = pnand %p1041_p9, %p1038_p8 }
  0x1c   :  { %1046 = shalt.err (!%p1043_p10)
}
  0x1d   :  { %s1047_s1 = scalar_lea.vmem %s62_s28, 1024  ;;  %p1052_p12 = scmp.lt.s32.totalorder %s62_s28, %s62_s28 }
  0x1e   :  { %p1048_p11 = scmp.ne.s32.totalorder %s62_s28, %s1047_s1  ;;  %p1053_p13 = scmp.lt.s32.totalorder %s1047_s1, %s1047_s1 }
  0x20   :  { %p1054_p0 = por %p1053_p13, %p1052_p12 }
  0x22   :  { %p1055_p1 = pnand %p1054_p0, %p1048_p11 }
  0x24   :  { %1058 = shalt.err (!%p1055_p1)
}
  0x25   :  { %s1206_s14 = smov 64   ;;  %s1207_s19 = smov 4  }
  0x26   :  { %67 = dma.hbm_to_vmem [thread:$0]  %s1452_s3, 1024, %s62_s28, [#allocation9], %s1206_s14, %s1206_s14, %s1207_s19  }
  0x27   :  { %s1059_s24 = scalar_lea.hbm %s1455_s6, 1024 }
  0x28   :  { %p1060_p2 = scmp.ne.s32.totalorder %s1455_s6, %s1059_s24  ;;  %p1063_p3 = scmp.lt.u32.totalorder %s1059_s24, %s1455_s6 }
  0x2a   :  { %p1065_p4 = pnand %p1063_p3, %p1060_p2 }
  0x2c   :  { %1068 = shalt.err (!%p1065_p4)
}
  0x2d   :  { %s1069_s11 = scalar_lea.vmem %s88_s30, 1024  ;;  %p1074_p6 = scmp.lt.s32.totalorder %s88_s30, %s88_s30 }
  0x2e   :  { %p1070_p5 = scmp.ne.s32.totalorder %s88_s30, %s1069_s11  ;;  %p1075_p7 = scmp.lt.s32.totalorder %s1069_s11, %s1069_s11 }
  0x30   :  { %p1076_p8 = por %p1075_p7, %p1074_p6 }
  0x32   :  { %p1077_p9 = pnand %p1076_p8, %p1070_p5 }
  0x34   :  { %1080 = shalt.err (!%p1077_p9)
}
  0x35   :  { %93 = dma.hbm_to_vmem [thread:$0]  %s1455_s6, 1024, %s88_s30, [#allocation12], %s1206_s14, %s1206_s14, %s1207_s19  }
  0x36   :  { %s1208_s12 = smov [#allocation2]   ;;  %s1209_s15 = smov [#allocation7]  }
  0x37   :  { %s25_s13 = sshll.u32 %s1208_s12, 4  ;;  %s49_s16 = sshll.u32 %s1209_s15, 4  ;;  %s26_s13 = int_to_ptr.vmem [resolvable:$true] %s25_s13  ;;  %s50_s16 = int_to_ptr.vmem [resolvable:$true] %s49_s16 }
  0x38   :  { %s1081_s1 = scalar_lea.hbm %s1449_s0, 128 }
  0x39   :  { %p1082_p10 = scmp.ne.s32.totalorder %s1449_s0, %s1081_s1  ;;  %p1085_p11 = scmp.lt.u32.totalorder %s1081_s1, %s1449_s0 }
  0x3b   :  { %p1087_p12 = pnand %p1085_p11, %p1082_p10 }
  0x3d   :  { %1090 = shalt.err (!%p1087_p12)
}
  0x3e   :  { %s1091_s6 = scalar_lea.vmem %s26_s13, 128  ;;  %p1096_p0 = scmp.lt.s32.totalorder %s26_s13, %s26_s13 }
  0x3f   :  { %p1092_p13 = scmp.ne.s32.totalorder %s26_s13, %s1091_s6  ;;  %p1097_p1 = scmp.lt.s32.totalorder %s1091_s6, %s1091_s6 }
  0x41   :  { %p1098_p2 = por %p1097_p1, %p1096_p0 }
  0x43   :  { %p1099_p3 = pnand %p1098_p2, %p1092_p13 }
  0x45   :  { %1102 = shalt.err (!%p1099_p3)
}
  0x46   :  { %31 = dma.hbm_to_vmem [thread:$0]  %s1449_s0, 128, %s26_s13, [#allocation3], %s1206_s14, %s1206_s14, %s1207_s19  }
  0x47   :  { %s1103_s27 = scalar_lea.hbm %s1451_s2, 1024 }
  0x48   :  { %p1104_p4 = scmp.ne.s32.totalorder %s1451_s2, %s1103_s27  ;;  %p1107_p5 = scmp.lt.u32.totalorder %s1103_s27, %s1451_s2 }
  0x4a   :  { %p1109_p6 = pnand %p1107_p5, %p1104_p4 }
  0x4c   :  { %1112 = shalt.err (!%p1109_p6)
}
  0x4d   :  { %s1113_s12 = scalar_lea.vmem %s50_s16, 1024  ;;  %p1118_p8 = scmp.lt.s32.totalorder %s50_s16, %s50_s16 }
  0x4e   :  { %p1114_p7 = scmp.ne.s32.totalorder %s50_s16, %s1113_s12  ;;  %p1119_p9 = scmp.lt.s32.totalorder %s1113_s12, %s1113_s12 }
  0x50   :  { %p1120_p10 = por %p1119_p9, %p1118_p8 }
  0x52   :  { %p1121_p11 = pnand %p1120_p10, %p1114_p7 }
  0x54   :  { %1124 = shalt.err (!%p1121_p11)
}
  0x55   :  { %55 = dma.hbm_to_vmem [thread:$0]  %s1451_s2, 1024, %s50_s16, [#allocation6], %s1206_s14, %s1206_s14, %s1207_s19  }
  0x56   :  { %s1210_s15 = smov [#allocation10]   ;;  %s1211_s18 = smov [#allocation13]  }
  0x57   :  { %s73_s17 = sshll.u32 %s1210_s15, 4  ;;  %s101_s1 = sshll.u32 %s1211_s18, 4  ;;  %s74_s17 = int_to_ptr.vmem [resolvable:$true] %s73_s17  ;;  %s102_s1 = int_to_ptr.vmem [resolvable:$true] %s101_s1 }
  0x58   :  { %s1125_s22 = scalar_lea.hbm %s1453_s4, 1024 }
  0x59   :  { %p1126_p12 = scmp.ne.s32.totalorder %s1453_s4, %s1125_s22  ;;  %p1129_p13 = scmp.lt.u32.totalorder %s1125_s22, %s1453_s4 }
  0x5b   :  { %p1131_p0 = pnand %p1129_p13, %p1126_p12 }
  0x5d   :  { %1134 = shalt.err (!%p1131_p0)
}
  0x5e   :  { %s1135_s2 = scalar_lea.vmem %s74_s17, 1024  ;;  %p1140_p2 = scmp.lt.s32.totalorder %s74_s17, %s74_s17 }
  0x5f   :  { %p1136_p1 = scmp.ne.s32.totalorder %s74_s17, %s1135_s2  ;;  %p1141_p3 = scmp.lt.s32.totalorder %s1135_s2, %s1135_s2 }
  0x61   :  { %p1142_p4 = por %p1141_p3, %p1140_p2 }
  0x63   :  { %p1143_p5 = pnand %p1142_p4, %p1136_p1 }
  0x65   :  { %1146 = shalt.err (!%p1143_p5)
}
  0x66   :  { %79 = dma.hbm_to_vmem [thread:$0]  %s1453_s4, 1024, %s74_s17, [#allocation9], %s1206_s14, %s1206_s14, %s1207_s19  }
  0x67   :  { %s1147_s29 = scalar_lea.hbm %s1457_s8, 1024 }
  0x68   :  { %p1148_p6 = scmp.ne.s32.totalorder %s1457_s8, %s1147_s29  ;;  %p1151_p7 = scmp.lt.u32.totalorder %s1147_s29, %s1457_s8 }
  0x6a   :  { %p1153_p8 = pnand %p1151_p7, %p1148_p6 }
  0x6c   :  { %1156 = shalt.err (!%p1153_p8)
}
  0x6d   :  { %s1157_s0 = scalar_lea.vmem %s102_s1, 1024  ;;  %p1162_p10 = scmp.lt.s32.totalorder %s102_s1, %s102_s1 }
  0x6e   :  { %p1158_p9 = scmp.ne.s32.totalorder %s102_s1, %s1157_s0  ;;  %p1163_p11 = scmp.lt.s32.totalorder %s1157_s0, %s1157_s0 }
  0x70   :  { %p1164_p12 = por %p1163_p11, %p1162_p10 }
  0x72   :  { %p1165_p13 = pnand %p1164_p12, %p1158_p9 }
  0x74   :  { %1168 = shalt.err (!%p1165_p13)
}
  0x75   :  { %107 = dma.hbm_to_vmem [thread:$0]  %s1457_s8, 1024, %s102_s1, [#allocation12], %s1206_s14, %s1206_s14, %s1207_s19  }
  0x76   :  { %1191 = dma.done.wait [#allocation3], 128  }
  0x77   :  { %1192 = vsyncadd [#allocation3], 4294967168 }
  0x78   :  { %1193 = dma.done.wait [#allocation6], 1280  }
  0x79   :  { %1194 = vsyncadd [#allocation6], 4294966016 }
  0x7a   :  { %1195 = dma.done.wait [#allocation9], 2048  }
  0x7b   :  { %1196 = vsyncadd [#allocation9], 4294965248 }
  0x7c   :  { %1197 = dma.done.wait [#allocation12], 2048  }
  0x7d   :  { %1198 = vsyncadd [#allocation12], 4294965248  ;;  %v1212_v0 = vmov 0   ;;  %v1213_v1 = vmov 1   ;;  %v1214_v2 = vmov 0.0   ;;  %v134_v3 = vld [vmem:[#allocation5] sm:$0xff]  ;;  %v132_v22 = vlaneseq }
  0x7e   :  { %971 = vset.pattern.permute.xlu0 %v1212_v0  ;;  %972 = vset.pattern.permute.xlu1 %v1213_v1  ;;  %v135_v4 = vld [vmem:[#allocation5 + $0x8] sm:$0xff]  ;;  %v974_v5 = vld [vmem:[#allocation7] sm:$0xff]   ;;  %v976_v7 = vld [vmem:[#allocation7 + $0x8] sm:$0xff]   ;;  %vm1215_vm0 = vmmov 0   ;;  %v1216_v27 = vmov 1.0|1.0  }
  0x7f   :  { %854 = vmatprep.subr.bf16.mxu0 %v1214_v2  ;;  %874 = vmatprep.subr.bf16.mxu1 %v1214_v2  ;;  %v975_v6 = vld [vmem:[#allocation10] sm:$0xff]   ;;  %v977_v8 = vld [vmem:[#allocation10 + $0x8] sm:$0xff]   ;;  %v978_v9 = vld [vmem:[#allocation7 + $0x10] sm:$0xff]   ;;  %v133_v24 = vand.u32 127, %v132_v22  ;;  %s1217_s20 = smov [#allocation14]  }
  0x80   :  { %137 = vperm.xlu0 %971, %v134_v3   ;;  %148 = vperm.xlu1 %972, %v134_v3   ;;  %v979_v10 = vld [vmem:[#allocation10 + $0x10] sm:$0xff]   ;;  %v980_v11 = vld [vmem:[#allocation7 + $0x18] sm:$0xff]   ;;  %v982_v13 = vld [vmem:[#allocation7 + $0x20] sm:$0xff]   ;;  %s737_s21 = sshll.u32 %s1217_s20, 4  ;;  %s738_s21 = int_to_ptr.vmem [resolvable:$true] %s737_s21 }
  0x81   :  { %855 = vmatpush3.bf16.msra.mxu0 %v974_v5  ;;  %875 = vmatpush3.bf16.msra.mxu1 %v975_v6  ;;  %v981_v12 = vld [vmem:[#allocation10 + $0x18] sm:$0xff]   ;;  %v983_v14 = vld [vmem:[#allocation10 + $0x20] sm:$0xff]   ;;  %v984_v15 = vld [vmem:[#allocation7 + $0x28] sm:$0xff]   ;;  %p1174_p1 = scmp.lt.s32.totalorder %s738_s21, %s738_s21 }
  0x82   :  { %856 = vmatprep.subr.bf16.mxu0 %v1214_v2  ;;  %876 = vmatprep.subr.bf16.mxu1 %v1214_v2  ;;  %v985_v16 = vld [vmem:[#allocation10 + $0x28] sm:$0xff]   ;;  %v986_v17 = vld [vmem:[#allocation7 + $0x30] sm:$0xff]   ;;  %v988_v19 = vld [vmem:[#allocation7 + $0x38] sm:$0xff]  }
  0x83   :  { %870 = vmatprep.mubr.msk.bf16.mxu0 %vm1215_vm0, %v1214_v2  ;;  %890 = vmatprep.mubr.msk.bf16.mxu1 %vm1215_vm0, %v1214_v2  ;;  %v987_v18 = vld [vmem:[#allocation10 + $0x30] sm:$0xff]   ;;  %v989_v20 = vld [vmem:[#allocation10 + $0x38] sm:$0xff]   ;;  %v990_v21 = vld [vmem:[#allocation2] sm:$0xff]  }
  0x84   :  { %140 = vperm.xlu0 %971, %v135_v4   ;;  %151 = vperm.xlu1 %972, %v135_v4   ;;  %v991_v26 = vld [vmem:[#allocation8] sm:$0xff]   ;;  %v992_v28 = vld [vmem:[#allocation8 + $0x8] sm:$0xff]   ;;  %v993_v29 = vld [vmem:[#allocation8 + $0x10] sm:$0xff]  }
  0x85   :  { %857 = vmatpush3.bf16.msra.mxu0 %v976_v7  ;;  %877 = vmatpush3.bf16.msra.mxu1 %v977_v8  ;;  %v994_v30 = vld [vmem:[#allocation8 + $0x18] sm:$0xff]   ;;  %v995_v31 = vld [vmem:[#allocation8 + $0x20] sm:$0xff]   ;;  %v996_v32 = vld [vmem:[#allocation8 + $0x28] sm:$0xff]  }
  0x86   :  { %858 = vmatprep.subr.bf16.mxu0 %v1214_v2  ;;  %878 = vmatprep.subr.bf16.mxu1 %v1214_v2  ;;  %v997_v34 = vld [vmem:[#allocation8 + $0x30] sm:$0xff]   ;;  %v998_v36 = vld [vmem:[#allocation8 + $0x38] sm:$0xff]   ;;  %v999_v37 = vld [vmem:[#allocation11] sm:$0xff]  }
  0x87   :  { %v1000_v38 = vld [vmem:[#allocation11 + $0x8] sm:$0xff]   ;;  %v1001_v39 = vld [vmem:[#allocation11 + $0x10] sm:$0xff]   ;;  %v1002_v40 = vld [vmem:[#allocation11 + $0x18] sm:$0xff]  }
  0x88   :  { %973 = vset.pattern.permute.xlu0 %v1213_v1  ;;  %v1003_v41 = vld [vmem:[#allocation11 + $0x20] sm:$0xff]   ;;  %v1004_v45 = vld [vmem:[#allocation11 + $0x28] sm:$0xff]   ;;  %v1005_v47 = vld [vmem:[#allocation11 + $0x30] sm:$0xff]  }
  0x89   :  { %859 = vmatpush3.bf16.msra.mxu0 %v978_v9  ;;  %879 = vmatpush3.bf16.msra.mxu1 %v979_v10  ;;  %v1006_v48 = vld [vmem:[#allocation11 + $0x38] sm:$0xff]   ;;  %v1007_v49 = vld [vmem:[#allocation13] sm:$0xff]   ;;  %v1008_v50 = vld [vmem:[#allocation13 + $0x8] sm:$0xff]  }
  0x8a   :  { %860 = vmatprep.subr.bf16.mxu0 %v1214_v2  ;;  %880 = vmatprep.subr.bf16.mxu1 %v1214_v2  ;;  %v1009_v51 = vld [vmem:[#allocation13 + $0x10] sm:$0xff]   ;;  %v1010_v52 = vld [vmem:[#allocation13 + $0x18] sm:$0xff]   ;;  %v1011_v53 = vld [vmem:[#allocation13 + $0x20] sm:$0xff]  }
  0x8b   :  { %v1012_v54 = vld [vmem:[#allocation13 + $0x28] sm:$0xff]   ;;  %v1013_v10 = vld [vmem:[#allocation13 + $0x30] sm:$0xff]  }
  0x8c   :  { %v781_v62 = vld [vmem:[%s1454_s5] ss:$0 sm:$0xff] }
  0x8d   :  { %861 = vmatpush3.bf16.msra.mxu0 %v980_v11  ;;  %881 = vmatpush3.bf16.msra.mxu1 %v981_v12  ;;  %v1014_v11 = vld [vmem:[#allocation13 + $0x38] sm:$0xff]   ;;  %v782_v12 = vld [vmem:[%s1456_s7] ss:$0 sm:$0xff]  ;;  %s1169_s7 = scalar_lea.vmem %s738_s21, 128 }
  0x8e   :  { %862 = vmatprep.subr.bf16.mxu0 %v1214_v2  ;;  %882 = vmatprep.subr.bf16.mxu1 %v1214_v2  ;;  %p1170_p0 = scmp.ne.s32.totalorder %s738_s21, %s1169_s7  ;;  %p1175_p2 = scmp.lt.s32.totalorder %s1169_s7, %s1169_s7 }
  0x90   :  { %p1176_p3 = por %p1175_p2, %p1174_p1 }
  0x91   :  { %863 = vmatpush3.bf16.msra.mxu0 %v982_v13  ;;  %883 = vmatpush3.bf16.msra.mxu1 %v983_v14 }
  0x92   :  { %864 = vmatprep.subr.bf16.mxu0 %v1214_v2  ;;  %884 = vmatprep.subr.bf16.mxu1 %v1214_v2  ;;  %p1177_p4 = pnand %p1176_p3, %p1170_p0 }
  0x95   :  { %865 = vmatpush3.bf16.msra.mxu0 %v984_v15  ;;  %885 = vmatpush3.bf16.msra.mxu1 %v985_v16 }
  0x96   :  { %866 = vmatprep.subr.bf16.mxu0 %v1214_v2  ;;  %886 = vmatprep.subr.bf16.mxu1 %v1214_v2 }
  0x99   :  { %867 = vmatpush3.bf16.msra.mxu0 %v986_v17  ;;  %887 = vmatpush3.bf16.msra.mxu1 %v987_v18 }
  0x9a   :  { %868 = vmatprep.subr.bf16.mxu0 %v1214_v2  ;;  %888 = vmatprep.subr.bf16.mxu1 %v1214_v2 }
  0x9d   :  { %869 = vmatpush3.bf16.msra.mxu0 %v988_v19  ;;  %889 = vmatpush3.bf16.msra.mxu1 %v989_v20 }
  0x9e   :  { %894 = vmatprep.subr.bf16.mxu0 %v1214_v2  ;;  %914 = vmatprep.subr.bf16.mxu1 %v1214_v2 }
  0xa0   :  { %891 = vmatmul.mubr.bf16.vlgmr.msra.gmra.mrb[0].mxu1 %v990_v21 }
  0xa1   :  { %930 = vmatprep.mubr.msk.bf16.mxu1 %vm1215_vm0, %v1214_v2  ;;  %915 = vmatpush3.bf16.msra.mxu1 %v999_v37 }
  0xa2   :  { %916 = vmatprep.subr.bf16.mxu1 %v1214_v2 }
  0xa5   :  { %917 = vmatpush3.bf16.msra.mxu1 %v1000_v38 }
  0xa6   :  { %918 = vmatprep.subr.bf16.mxu1 %v1214_v2 }
  0xa9   :  { %919 = vmatpush3.bf16.msra.mxu1 %v1001_v39 }
  0xaa   :  { %920 = vmatprep.subr.bf16.mxu1 %v1214_v2 }
  0xad   :  { %921 = vmatpush3.bf16.msra.mxu1 %v1002_v40 }
  0xae   :  { %922 = vmatprep.subr.bf16.mxu1 %v1214_v2 }
  0xb1   :  { %923 = vmatpush3.bf16.msra.mxu1 %v1003_v41 }
  0xb2   :  { %924 = vmatprep.subr.bf16.mxu1 %v1214_v2 }
  0xb5   :  { %925 = vmatpush3.bf16.msra.mxu1 %v1004_v45 }
  0xb6   :  { %926 = vmatprep.subr.bf16.mxu1 %v1214_v2 }
  0xb9   :  { %927 = vmatpush3.bf16.msra.mxu1 %v1005_v47 }
  0xba   :  { %928 = vmatprep.subr.bf16.mxu1 %v1214_v2 }
  0xbd   :  { %929 = vmatpush3.bf16.msra.mxu1 %v1006_v48 }
  0xff   :  { %v138_v23 = vpop.permute.xlu0 %137  ;;  %v149_v33 = vpop.permute.xlu1 %148 }
 0x100   :  { %vm142_vm1 = vcmp.eq.s32.totalorder %v133_v24, %v138_v23  ;;  %vm153_vm4 = vcmp.eq.s32.totalorder %v133_v24, %v149_v33 }
 0x103   :  { %v141_v25 = vpop.permute.xlu0 %140  ;;  %v152_v35 = vpop.permute.xlu1 %151 }
 0x104   :  { %vm143_vm2 = vcmp.eq.s32.totalorder %v133_v24, %v141_v25  ;;  %vm154_vm5 = vcmp.eq.s32.totalorder %v133_v24, %v152_v35 }
 0x105   :  { %vm760_vm3 = vmpackc.low %vm143_vm2, %vm142_vm1 }
 0x106   :  { %871 = vmatmul.mubr.msk.bf16.vlgmr.msra.gmra.mrb[0].mxu0 %vm760_vm3, %v1216_v27  ;;  %vm779_vm6 = vmpackc.low %vm154_vm5, %vm153_vm4 }
 0x107   :  { %895 = vmatpush3.bf16.msra.mxu0 %v991_v26  ;;  %910 = vmatprep.mubr.msk.bf16.mxu0 %vm1215_vm0, %v1214_v2 }
 0x108   :  { %896 = vmatprep.subr.bf16.mxu0 %v1214_v2 }
 0x10b   :  { %897 = vmatpush3.bf16.msra.mxu0 %v992_v28 }
 0x10c   :  { %898 = vmatprep.subr.bf16.mxu0 %v1214_v2 }
 0x10f   :  { %899 = vmatpush3.bf16.msra.mxu0 %v993_v29 }
 0x110   :  { %900 = vmatprep.subr.bf16.mxu0 %v1214_v2 }
 0x113   :  { %901 = vmatpush3.bf16.msra.mxu0 %v994_v30 }
 0x114   :  { %902 = vmatprep.subr.bf16.mxu0 %v1214_v2 }
 0x117   :  { %903 = vmatpush3.bf16.msra.mxu0 %v995_v31 }
 0x118   :  { %904 = vmatprep.subr.bf16.mxu0 %v1214_v2 }
 0x11b   :  { %905 = vmatpush3.bf16.msra.mxu0 %v996_v32 }
 0x11c   :  { %906 = vmatprep.subr.bf16.mxu0 %v1214_v2 }
 0x11f   :  { %907 = vmatpush3.bf16.msra.mxu0 %v997_v34 }
 0x120   :  { %908 = vmatprep.subr.bf16.mxu0 %v1214_v2 }
 0x123   :  { %909 = vmatpush3.bf16.msra.mxu0 %v998_v36 }
 0x124   :  { %934 = vmatprep.subr.bf16.mxu0 %v1214_v2 }
 0x126   :  { %911 = vmatmul.mubr.msk.bf16.vlgmr.msra.gmra.mrb[4].mxu0 %vm779_vm6, %v1216_v27 }
 0x127   :  { %950 = vmatprep.mubr.msk.bf16.mxu0 %vm1215_vm0, %v1214_v2  ;;  %935 = vmatpush3.bf16.msra.mxu0 %v1007_v49 }
 0x128   :  { %936 = vmatprep.subr.bf16.mxu0 %v1214_v2 }
 0x12b   :  { %937 = vmatpush3.bf16.msra.mxu0 %v1008_v50 }
 0x12c   :  { %938 = vmatprep.subr.bf16.mxu0 %v1214_v2 }
 0x12f   :  { %939 = vmatpush3.bf16.msra.mxu0 %v1009_v51 }
 0x130   :  { %940 = vmatprep.subr.bf16.mxu0 %v1214_v2 }
 0x133   :  { %941 = vmatpush3.bf16.msra.mxu0 %v1010_v52 }
 0x134   :  { %942 = vmatprep.subr.bf16.mxu0 %v1214_v2 }
 0x137   :  { %943 = vmatpush3.bf16.msra.mxu0 %v1011_v53 }
 0x138   :  { %944 = vmatprep.subr.bf16.mxu0 %v1214_v2 }
 0x13b   :  { %945 = vmatpush3.bf16.msra.mxu0 %v1012_v54 }
 0x13c   :  { %946 = vmatprep.subr.bf16.mxu0 %v1214_v2 }
 0x13f   :  { %947 = vmatpush3.bf16.msra.mxu0 %v1013_v10 }
 0x140   :  { %948 = vmatprep.subr.bf16.mxu0 %v1214_v2  ;;  %v791_v2 = vld [vmem:[%s1458_s9] ss:$0 sm:$0xff] }
 0x143   :  { %949 = vmatpush3.bf16.msra.mxu0 %v1014_v11 }
 0x173   :  { %v369_v42 = vpop.f32.mrb[0].mxu1 }
 0x174   :  { %v892_v43 = vpop.f32.mrb[1].mxu1 }
 0x175   :  { %v372_v44 = vpop.f32.mrb[2].mxu1 }
 0x176   :  { %v893_v46 = vpop.f32.mrb[3].mxu1 }
 0x1d9   :  { %v274_v55 = vpop.f32.mrb[0].mxu0 }
 0x1da   :  { %v370_v56 = vadd.f32 %v369_v42, %v274_v55  ;;  %v872_v57 = vpop.f32.mrb[1].mxu0 }
 0x1db   :  { %v277_v58 = vpop.f32.mrb[2].mxu0 }
 0x1dc   :  { %v373_v59 = vadd.f32 %v372_v44, %v277_v58  ;;  %v873_v60 = vpop.f32.mrb[3].mxu0 }
 0x1f9   :  { %v474_v61 = vpop.f32.mrb[4].mxu0 }
 0x1fa   :  { %v481_v63 = vadd.f32 %v474_v61, %v370_v56  ;;  %v912_v0 = vpop.f32.mrb[5].mxu0 }
 0x1fb   :  { %v477_v1 = vpop.f32.mrb[6].mxu0 }
 0x1fc   :  { %v490_v3 = vadd.f32 %v781_v62, %v481_v63  ;;  %v482_v4 = vadd.f32 %v477_v1, %v373_v59  ;;  %v913_v5 = vpop.f32.mrb[7].mxu0 }
 0x1fe   :  { %v491_v6 = vadd.f32 %v781_v62, %v482_v4  ;;  %v492_v7 = vmax.f32 %v490_v3, 0.0 }
 0x200   :  { %v493_v8 = vmax.f32 %v491_v6, 0.0 }
 0x202   :  { %v494_v9 = vpack.c.bf16 %v493_v8, %v492_v7 }
 0x204   :  { %931 = vmatmul.mubr.bf16.vlgmr.msra.gmra.mrb[4].mxu1 %v494_v9 }
 0x2d7   :  { %v600_v13 = vpop.f32.mrb[4].mxu1 }
 0x2d8   :  { %v601_v14 = vadd.f32 %v782_v12, %v600_v13  ;;  %v932_v15 = vpop.f32.mrb[5].mxu1 }
 0x2d9   :  { %v603_v16 = vpop.f32.mrb[6].mxu1 }
 0x2da   :  { %v604_v17 = vadd.f32 %v782_v12, %v603_v16  ;;  %v933_v18 = vpop.f32.mrb[7].mxu1  ;;  %v607_v19 = vmax.f32 %v601_v14, 0.0 }
 0x2dc   :  { %v608_v20 = vmax.f32 %v604_v17, 0.0 }
 0x2de   :  { %v609_v21 = vpack.c.bf16 %v608_v20, %v607_v19 }
 0x2e0   :  { %951 = vmatmul.mubr.bf16.vlgmr.msra.gmra.mrb[8].mxu0 %v609_v21 }
 0x3b3   :  { %v715_v22 = vpop.f32.mrb[8].mxu0 }
 0x3b4   :  { %v952_v23 = vpop.f32.mrb[9].mxu0  ;;  %v716_v25 = vadd.f32 %v791_v2, %v715_v22 }
 0x3b5   :  { %v718_v24 = vpop.f32.mrb[10].mxu0 }
 0x3b6   :  { %v719_v26 = vadd.f32 %v791_v2, %v718_v24  ;;  %v953_v27 = vpop.f32.mrb[11].mxu0 }
 0x3b8   :  { %v807_v28 = vpack.c.bf16 %v719_v26, %v716_v25 }
 0x3ba   :  { %808 = vst [vmem:[#allocation14] sm:$0xff] %v807_v28  }
 0x3bb   :  { %1180 = shalt.err (!%p1177_p4)
}
 0x3bc   :  { %s1181_s23 = scalar_lea.hbm %s1459_s10, 128 }
 0x3bd   :  { %p1182_p5 = scmp.ne.s32.totalorder %s1459_s10, %s1181_s23  ;;  %p1185_p6 = scmp.lt.u32.totalorder %s1181_s23, %s1459_s10 }
 0x3bf   :  { %p1187_p7 = pnand %p1185_p6, %p1182_p5 }
 0x3c1   :  { %1190 = shalt.err (!%p1187_p7)
}
 0x3c2   :  { %743 = dma.vmem_to_hbm [thread:$0]  %s738_s21, 128, %s1459_s10, [#allocation4], %s1206_s14, %s1206_s14, %s1207_s19  }
 0x3c3   :  { %1199 = dma.done.wait [#allocation4], 128  }
 0x3c4   :  { %1200 = vsyncadd [#allocation4], 4294967168 }
 0x3c5   :  { %747 = vsyncpa [#allocation3], 1 }
 0x3c6   :  { %748 = vsyncpa [#allocation6], 1 }
 0x3c7   :  { %749 = vsyncpa [#allocation9], 1 }
 0x3c8   :  { %750 = vsyncpa [#allocation12], 1 }
 0x3c9   :  { %751 = vsyncpa [#allocation4], 1 }

</bundles_post_ra>
